<compile_context>
chip_gen: v7x
topology: tpu7x:2x2x1
jax: 0.10.0
libtpu: 0.0.40
codegen_flags: <defaults>
</compile_context>

<pallas_src>
import jax
import jax.numpy as jnp
from jax.experimental import pallas as pl
from jax.experimental.pallas import tpu as pltpu

LANE = 128
NEG_PAD_BIAS = -1e30  # padded fc3 columns get ~0 softmax probability


def latent_classifier_kernel(z_ref, w1_ref, b1_ref, w2_ref, b2_ref,
                             w3_ref, b3_ref, o_ref):
    # fc1 + relu  (bf16 MXU inputs, f32 accumulation, f32 elementwise)
    h1 = jnp.dot(z_ref[...], w1_ref[...],
                 preferred_element_type=jnp.float32) + b1_ref[...]
    h1 = jnp.maximum(h1, 0.0)

    # fc2 + relu
    h2 = jnp.dot(h1.astype(jnp.bfloat16), w2_ref[...],
                 preferred_element_type=jnp.float32) + b2_ref[...]
    h2 = jnp.maximum(h2, 0.0)

    # fc3 logits (lane-padded to 128 cols; padded bias is -1e30, kept in f32
    # so exp(pad - max) underflows to exactly 0 and can never be the row max)
    logits = jnp.dot(h2.astype(jnp.bfloat16), w3_ref[...],
                     preferred_element_type=jnp.float32) + b3_ref[...]

    # numerically-stable softmax over the last axis
    m = jnp.max(logits, axis=-1, keepdims=True)
    e = jnp.exp(logits - m)
    denom = jnp.sum(e, axis=-1, keepdims=True)
    inv = pl.reciprocal(denom, approx=True)   # EUP slot, keeps VALU free
    o_ref[...] = (e * inv).astype(o_ref.dtype)


def prepare_params(params):
    """One-time transform of PyTorch-layout params into kernel layout.

    Hoisted out of the forward pass so per-call HBM traffic contains no
    transposes/casts:
      * (out, in) -> (in, out) transpose
      * weights cast to bf16 (native MXU input, half the DMA bytes)
      * fc3 zero-padded to a lane-dense 128 output columns; padded bias
        entries set to a huge negative so they carry ~0 softmax mass.
    """
    w1 = jnp.asarray(params["w1"]).T.astype(jnp.bfloat16)       # (D,   D/2)
    w2 = jnp.asarray(params["w2"]).T.astype(jnp.bfloat16)       # (D/2, D/4)
    w3 = jnp.asarray(params["w3"]).T.astype(jnp.float32)        # (D/4, 4)
    b1 = jnp.asarray(params["b1"]).reshape(1, -1).astype(jnp.float32)
    b2 = jnp.asarray(params["b2"]).reshape(1, -1).astype(jnp.float32)
    b3 = jnp.asarray(params["b3"]).reshape(1, -1).astype(jnp.float32)

    h2, c = w3.shape
    c_pad = max(LANE, ((c + LANE - 1) // LANE) * LANE)
    w3p = jnp.zeros((h2, c_pad), jnp.float32).at[:, :c].set(w3)
    w3p = w3p.astype(jnp.bfloat16)
    b3p = jnp.full((1, c_pad), NEG_PAD_BIAS, jnp.float32).at[:, :c].set(b3)

    return {"w1": w1, "b1": b1, "w2": w2, "b2": b2,
            "w3": w3p, "b3": b3p, "num_classes": int(c)}


def _round_up(x, m):
    return ((x + m - 1) // m) * m


def _vmem_limit_bytes():
    """Generation-aware VMEM scoped limit.

    v7x has 64 MiB physical VMEM per TensorCore -> cap the limit near 40 MiB
    to leave room for intermediates / compiler scratch; v5e/v6e (128 MiB)
    comfortably get 64 MiB.  Falls back to the conservative (v7x) value if the
    hardware query is unavailable.
    """
    try:
        cap = int(pltpu.get_tpu_info().vmem_capacity_bytes)
    except Exception:
        cap = 64 * 1024 * 1024
    return int(min(64 * 1024 * 1024,
                   max(32 * 1024 * 1024, cap - 24 * 1024 * 1024)))


def latent_classifier_forward(z, kparams, *, batch_tile=None):
    """z: (B, latent_dim) float array. kparams: output of prepare_params."""
    B, D = z.shape
    w1, b1 = kparams["w1"], kparams["b1"]
    w2, b2 = kparams["w2"], kparams["b2"]
    w3, b3 = kparams["w3"], kparams["b3"]
    num_classes = kparams["num_classes"]

    H1 = w1.shape[1]
    H2 = w2.shape[1]
    C_pad = w3.shape[1]

    # Batch tiling: 256 rows fill the 256-wide MXU on v6e/v7x; 128 otherwise.
    # Round to a multiple of 16 (bf16 sublane packing); pad ragged tails.
    if batch_tile is None:
        batch_tile = 256 if B >= 256 else 128
    bt = min(batch_tile, _round_up(max(B, 1), 16))
    bt = _round_up(bt, 16)
    B_pad = _round_up(B, bt)

    # Ship z as bf16: halves z DMA bytes / VMEM and removes a per-step cast.
    z_in = z.astype(jnp.bfloat16)
    if B_pad != B:
        z_in = jnp.pad(z_in, ((0, B_pad - B), (0, 0)))

    grid = (B_pad // bt,)

    cost = pl.CostEstimate(
        flops=2 * B_pad * (D * H1 + H1 * H2 + H2 * C_pad),
        transcendentals=B_pad * C_pad,
        bytes_accessed=(z_in.size * 2 + B_pad * C_pad * 4
                        + w1.size * 2 + w2.size * 2 + w3.size * 2
                        + (b1.size + b2.size + b3.size) * 4),
    )

    # Weights/biases never change across grid steps (constant index_map), so a
    # single pipeline buffer suffices -> Buffered(1) halves their VMEM cost.
    const_buf = pl.Buffered(1)

    out = pl.pallas_call(
        latent_classifier_kernel,
        out_shape=jax.ShapeDtypeStruct((B_pad, C_pad), jnp.float32),
        grid_spec=pltpu.PrefetchScalarGridSpec(
            num_scalar_prefetch=0,
            grid=grid,
            in_specs=[
                pl.BlockSpec((bt, D), lambda i: (i, 0)),          # z tile (bf16)
                pl.BlockSpec((D, H1), lambda i: (0, 0),
                             pipeline_mode=const_buf),            # W1 (bf16)
                pl.BlockSpec((1, H1), lambda i: (0, 0),
                             pipeline_mode=const_buf),            # b1 (f32)
                pl.BlockSpec((H1, H2), lambda i: (0, 0),
                             pipeline_mode=const_buf),            # W2 (bf16)
                pl.BlockSpec((1, H2), lambda i: (0, 0),
                             pipeline_mode=const_buf),            # b2 (f32)
                pl.BlockSpec((H2, C_pad), lambda i: (0, 0),
                             pipeline_mode=const_buf),            # W3 padded (bf16)
                pl.BlockSpec((1, C_pad), lambda i: (0, 0),
                             pipeline_mode=const_buf),            # b3 padded (f32)
            ],
            out_specs=pl.BlockSpec((bt, C_pad), lambda i: (i, 0)),
        ),
        compiler_params=pltpu.CompilerParams(
            dimension_semantics=("parallel",),
            vmem_limit_bytes=_vmem_limit_bytes(),
        ),
        cost_estimate=cost,
    )(z_in, w1, b1, w2, b2, w3, b3)

    # Drop batch padding and the lane-padded softmax columns (~0 probability).
    return out[:B, :num_classes]


def init_params(key, latent_dim):
    """Deterministic init mimicking nn.Linear defaults (uniform +/- 1/sqrt(fan_in))."""
    dims = [(latent_dim // 2, latent_dim),
            (latent_dim // 4, latent_dim // 2),
            (4, latent_dim // 4)]
    params = {}
    keys = jax.random.split(key, 2 * len(dims))
    for idx, (out_f, in_f) in enumerate(dims):
        bound = 1.0 / jnp.sqrt(in_f)
        params[f"w{idx + 1}"] = jax.random.uniform(
            keys[2 * idx], (out_f, in_f), jnp.float32, -bound, bound)
        params[f"b{idx + 1}"] = jax.random.uniform(
            keys[2 * idx + 1], (out_f,), jnp.float32, -bound, bound)
    return params


def _reference_forward(z, params):
    """Pure-JAX f32 reference for a loose correctness check."""
    x = jnp.maximum(z @ params["w1"].T + params["b1"], 0.0)
    x = jnp.maximum(x @ params["w2"].T + params["b2"], 0.0)
    logits = x @ params["w3"].T + params["b3"]
    return jax.nn.softmax(logits, axis=1)


if __name__ == "__main__":
    LATENT_DIM = 512   # small, consistent with the module (default 4096 scaled down)
    BATCH = 512        # >= 2 grid steps at batch_tile=256

    key = jax.random.PRNGKey(0)
    k_params, k_z = jax.random.split(key)
    params = init_params(k_params, LATENT_DIM)
    z = jax.random.normal(k_z, (BATCH, LATENT_DIM), jnp.float32)

    kparams = prepare_params(params)   # one-time layout/dtype transform
    out = latent_classifier_forward(z, kparams)
    out = jax.block_until_ready(out)

    # sanity: shape, finite, softmax rows sum to ~1 (approx reciprocal + bf16 math)
    assert out.shape == (BATCH, 4)
    assert bool(jnp.all(jnp.isfinite(out)))
    assert bool(jnp.all(jnp.abs(jnp.sum(out, axis=1) - 1.0) < 1e-2))

    # loose agreement with the f32 reference (bf16 z + bf16 weights at the MXU
    # => small, expected per-element deviations)
    ref = _reference_forward(z, params)
    assert bool(jnp.max(jnp.abs(out - ref)) < 5e-2)

    print("KERNEL_OK")
</pallas_src>

<mosaic_0001>
module attributes {stable_mosaic.version = 11 : i64} {
  func.func @latent_classifier_kernel(%arg0: i32, %arg1: memref<256x512xbf16, #tpu.memory_space<vmem>>, %arg2: memref<512x256xbf16, #tpu.memory_space<vmem>>, %arg3: memref<1x256xf32, #tpu.memory_space<vmem>>, %arg4: memref<256x128xbf16, #tpu.memory_space<vmem>>, %arg5: memref<1x128xf32, #tpu.memory_space<vmem>>, %arg6: memref<128x128xbf16, #tpu.memory_space<vmem>>, %arg7: memref<1x128xf32, #tpu.memory_space<vmem>>, %arg8: memref<256x128xf32, #tpu.memory_space<vmem>>) attributes {dimension_semantics = [#tpu.dimension_semantics<parallel>], iteration_bounds = array<i64: 2>, scalar_prefetch = 0 : i64, scratch_operands = 0 : i64, tpu.core_type = #tpu.core_type<tc>, window_params = [{transform_indices = @transform_0, window_bounds = array<i64: 256, 512>}, {pipeline_mode = #tpu.pipeline_mode<synchronous>, transform_indices = @transform_1, window_bounds = array<i64: 512, 256>}, {pipeline_mode = #tpu.pipeline_mode<synchronous>, transform_indices = @transform_2, window_bounds = array<i64: 1, 256>}, {pipeline_mode = #tpu.pipeline_mode<synchronous>, transform_indices = @transform_3, window_bounds = array<i64: 256, 128>}, {pipeline_mode = #tpu.pipeline_mode<synchronous>, transform_indices = @transform_4, window_bounds = array<i64: 1, 128>}, {pipeline_mode = #tpu.pipeline_mode<synchronous>, transform_indices = @transform_5, window_bounds = array<i64: 128, 128>}, {pipeline_mode = #tpu.pipeline_mode<synchronous>, transform_indices = @transform_6, window_bounds = array<i64: 1, 128>}, {transform_indices = @transform_7, window_bounds = array<i64: 256, 128>}]} {
    %c0 = arith.constant 0 : index
    %c0_0 = arith.constant 0 : index
    %0 = vector.load %arg1[%c0, %c0_0] : memref<256x512xbf16, #tpu.memory_space<vmem>>, vector<256x512xbf16>
    %c0_1 = arith.constant 0 : index
    %c0_2 = arith.constant 0 : index
    %1 = vector.load %arg2[%c0_1, %c0_2] : memref<512x256xbf16, #tpu.memory_space<vmem>>, vector<512x256xbf16>
    %cst = arith.constant dense<0.000000e+00> : vector<256x256xf32>
    %2 = tpu.matmul %0, %1, %cst {dimension_numbers = #tpu.dot_dimension_numbers<[1], [0], [0], [1], [0, 0, 1, 1], [], []>} : vector<256x512xbf16>, vector<512x256xbf16>, vector<256x256xf32> -> vector<256x256xf32>
    %c0_3 = arith.constant 0 : index
    %c0_4 = arith.constant 0 : index
    %3 = vector.load %arg3[%c0_3, %c0_4] : memref<1x256xf32, #tpu.memory_space<vmem>>, vector<1x256xf32>
    %4 = vector.broadcast %3 : vector<1x256xf32> to vector<256x256xf32>
    %5 = arith.addf %2, %4 : vector<256x256xf32>
    %cst_5 = arith.constant 0.000000e+00 : f32
    %6 = vector.broadcast %cst_5 : f32 to vector<256x256xf32>
    %7 = arith.maximumf %5, %6 : vector<256x256xf32>
    %8 = arith.truncf %7 : vector<256x256xf32> to vector<256x256xbf16>
    %c0_6 = arith.constant 0 : index
    %c0_7 = arith.constant 0 : index
    %9 = vector.load %arg4[%c0_6, %c0_7] : memref<256x128xbf16, #tpu.memory_space<vmem>>, vector<256x128xbf16>
    %cst_8 = arith.constant dense<0.000000e+00> : vector<256x128xf32>
    %10 = tpu.matmul %8, %9, %cst_8 {dimension_numbers = #tpu.dot_dimension_numbers<[1], [0], [0], [1], [0, 0, 1, 1], [], []>} : vector<256x256xbf16>, vector<256x128xbf16>, vector<256x128xf32> -> vector<256x128xf32>
    %c0_9 = arith.constant 0 : index
    %c0_10 = arith.constant 0 : index
    %11 = vector.load %arg5[%c0_9, %c0_10] : memref<1x128xf32, #tpu.memory_space<vmem>>, vector<1x128xf32>
    %12 = vector.broadcast %11 : vector<1x128xf32> to vector<256x128xf32>
    %13 = arith.addf %10, %12 : vector<256x128xf32>
    %cst_11 = arith.constant 0.000000e+00 : f32
    %14 = vector.broadcast %cst_11 : f32 to vector<256x128xf32>
    %15 = arith.maximumf %13, %14 : vector<256x128xf32>
    %16 = arith.truncf %15 : vector<256x128xf32> to vector<256x128xbf16>
    %c0_12 = arith.constant 0 : index
    %c0_13 = arith.constant 0 : index
    %17 = vector.load %arg6[%c0_12, %c0_13] : memref<128x128xbf16, #tpu.memory_space<vmem>>, vector<128x128xbf16>
    %cst_14 = arith.constant dense<0.000000e+00> : vector<256x128xf32>
    %18 = tpu.matmul %16, %17, %cst_14 {dimension_numbers = #tpu.dot_dimension_numbers<[1], [0], [0], [1], [0, 0, 1, 1], [], []>} : vector<256x128xbf16>, vector<128x128xbf16>, vector<256x128xf32> -> vector<256x128xf32>
    %c0_15 = arith.constant 0 : index
    %c0_16 = arith.constant 0 : index
    %19 = vector.load %arg7[%c0_15, %c0_16] : memref<1x128xf32, #tpu.memory_space<vmem>>, vector<1x128xf32>
    %20 = vector.broadcast %19 : vector<1x128xf32> to vector<256x128xf32>
    %21 = arith.addf %18, %20 : vector<256x128xf32>
    %cst_17 = arith.constant dense<0xFF800000> : vector<256xf32>
    %22 = vector.multi_reduction <maximumf>, %21, %cst_17 [1] : vector<256x128xf32> to vector<256xf32>
    %23 = vector.shape_cast %22 : vector<256xf32> to vector<256x1xf32>
    %24 = vector.broadcast %23 : vector<256x1xf32> to vector<256x128xf32>
    %25 = arith.subf %21, %24 : vector<256x128xf32>
    %26 = math.exp %25 : vector<256x128xf32>
    %cst_18 = arith.constant dense<0.000000e+00> : vector<256xf32>
    %27 = vector.multi_reduction <add>, %26, %cst_18 [1] : vector<256x128xf32> to vector<256xf32>
    %28 = vector.shape_cast %27 : vector<256xf32> to vector<256x1xf32>
    %29 = tpu.reciprocal %28 {approx = true} : vector<256x1xf32> -> vector<256x1xf32>
    %30 = vector.broadcast %29 : vector<256x1xf32> to vector<256x128xf32>
    %31 = arith.mulf %26, %30 : vector<256x128xf32>
    %c0_19 = arith.constant 0 : index
    %c0_20 = arith.constant 0 : index
    %32 = vector.load %arg8[%c0_19, %c0_20] : memref<256x128xf32, #tpu.memory_space<vmem>>, vector<256x128xf32>
    tpu.vector_store %arg8[%c0_19, %c0_20], %31 {strides = array<i32>} : memref<256x128xf32, #tpu.memory_space<vmem>>, vector<256x128xf32>,
    return
  }
  func.func @transform_0(%arg0: i32) -> (i32, i32) {
    %c0_i32 = arith.constant 0 : i32
    %c0_i32_0 = arith.constant 0 : i32
    return %arg0, %c0_i32 : i32, i32
  }
  func.func @transform_1(%arg0: i32) -> (i32, i32) {
    %c0_i32 = arith.constant 0 : i32
    %c0_i32_0 = arith.constant 0 : i32
    %c0_i32_1 = arith.constant 0 : i32
    return %c0_i32, %c0_i32_0 : i32, i32
  }
  func.func @transform_2(%arg0: i32) -> (i32, i32) {
    %c0_i32 = arith.constant 0 : i32
    %c0_i32_0 = arith.constant 0 : i32
    %c0_i32_1 = arith.constant 0 : i32
    return %c0_i32, %c0_i32_0 : i32, i32
  }
  func.func @transform_3(%arg0: i32) -> (i32, i32) {
    %c0_i32 = arith.constant 0 : i32
    %c0_i32_0 = arith.constant 0 : i32
    %c0_i32_1 = arith.constant 0 : i32
    return %c0_i32, %c0_i32_0 : i32, i32
  }
  func.func @transform_4(%arg0: i32) -> (i32, i32) {
    %c0_i32 = arith.constant 0 : i32
    %c0_i32_0 = arith.constant 0 : i32
    %c0_i32_1 = arith.constant 0 : i32
    return %c0_i32, %c0_i32_0 : i32, i32
  }
  func.func @transform_5(%arg0: i32) -> (i32, i32) {
    %c0_i32 = arith.constant 0 : i32
    %c0_i32_0 = arith.constant 0 : i32
    %c0_i32_1 = arith.constant 0 : i32
    return %c0_i32, %c0_i32_0 : i32, i32
  }
  func.func @transform_6(%arg0: i32) -> (i32, i32) {
    %c0_i32 = arith.constant 0 : i32
    %c0_i32_0 = arith.constant 0 : i32
    %c0_i32_1 = arith.constant 0 : i32
    return %c0_i32, %c0_i32_0 : i32, i32
  }
  func.func @transform_7(%arg0: i32) -> (i32, i32) {
    %c0_i32 = arith.constant 0 : i32
    %c0_i32_0 = arith.constant 0 : i32
    return %arg0, %c0_i32 : i32, i32
  }
}

</mosaic_0001>

<bundles_post_ra>
// kernel: tpu_custom_call.1
= control target key start
LH: loop header
LB: loop body
LE: loop exit
PB: predicated region body
PF: predicated region fallthrough
CT: control target
= control target key end

     0   :  { %s4620_s0 = inlined_call_operand.hbm [shape: bf16[512,512], index: 0, kind: input, shape index: {}]   ;;  %s4621_s1 = inlined_call_operand.hbm [shape: bf16[512,256], index: 1, kind: input, shape index: {}]   ;;  %s4622_s2 = inlined_call_operand.vmem [shape: f32[1,256], index: 2, kind: input, shape index: {}]   ;;  %s4623_s3 = inlined_call_operand.hbm [shape: bf16[256,128], index: 3, kind: input, shape index: {}]   ;;  %s4624_s4 = inlined_call_operand.vmem [shape: f32[1,128], index: 4, kind: input, shape index: {}]   ;;  %s4625_s5 = inlined_call_operand.hbm [shape: bf16[128,128], index: 5, kind: input, shape index: {}]   ;;  %s4626_s6 = inlined_call_operand.vmem [shape: f32[1,128], index: 6, kind: input, shape index: {}]   ;;  %s4627_s7 = inlined_call_operand.hbm [shape: f32[512,128], index: 7, kind: output, shape index: {}]  }
   0x1   :  { %4632 = sst [smem:[#allocation16_spill]] %s4621_s1 }
   0x2   :  { %12 = vsyncpa [#allocation3], 0 }
   0x3   :  { %14 = vsyncpa [#allocation3 + $0x1], 0 }
   0x4   :  { %15 = vsyncpa [#allocation6], 0 }
   0x5   :  { %16 = vsyncpa [#allocation9], 0 }
   0x6   :  { %17 = vsyncpa [#allocation4], 0 }
   0x7   :  { %19 = vsyncpa [#allocation4 + $0x1], 0  ;;  %s3813_s24 = smov 0   ;;  %s3815_s25 = smov 0  }
   0x8   :  { %s3817_s26 = smov 0   ;;  %s3819_s27 = smov 0  }
   0x9 LB: > { %s3834_s28 = sadd.s32 4294967295, %s3758_s27   ;;  %s2619_s29 = sadd.s32 4294967294, %s3758_s27   ;;  %s3758_s27 = sphi %s3819_s27, %s4655_s27   ;;  %s3754_s26 = sphi %s3817_s26, %s4654_s26   ;;  %s3750_s25 = sphi %s3815_s25, %s4653_s25   ;;  %s3746_s24 = sphi %s3813_s24, %s4652_s24  }
   0xa   : > { %p45_p0 = scmp.ne.s32.totalorder %s3750_s25, %s3746_s24  ;;  %p4628_p1 = scmp.eq.s32.totalorder %s3834_s28, 0 }
   0xb   : > { %p201_p3 = scmp.eq.s32.totalorder %s2619_s29, 1  ;;  %p2620_p5 = scmp.ge.s32.totalorder %s3758_s27, 1 }
   0xc   : > { %p3843_p4 = por %p4628_p1, %p45_p0  ;;  %p208_p7 = scmp.lt.s32.totalorder %s3758_s27, 3 }
   0xd   : > { %p3848_p6 = por %p201_p3, %p45_p0  ;;  %s3760_s10 = smov [#allocation5]  }
   0xe   : > { %s4633_s30 = scalar_select %p3843_p4, 1, 0 }
   0xf   : > { %s4634_s8 = scalar_select %p3848_p6, 1, 0 }
  0x10   : > { %p3853_p8 = pnand %p2620_p5, %p208_p7  ;;  %s220_s11 = sshll.u32 %s3760_s10, 4  ;;  %s3857_s11 = int_to_ptr.vmem [resolvable:$true] %s220_s11 }
  0x11   : > { %4635 = sst [smem:[#allocation15_spill]] %s4634_s8  ;;  %s3761_s13 = smov [#allocation7]  }
  0x12   : > { %s4636_s9 = scalar_select %p3853_p8, 1, 0 }
  0x13   : > { %p3157_p9 = pneg %p3853_p8  ;;  %s236_s14 = sshll.u32 %s3761_s13, 4  ;;  %s3868_s14 = int_to_ptr.vmem [resolvable:$true] %s236_s14 }
  0x14   : > { %s4638_s1 = sld [smem:[#allocation16_spill]] }
  0x15   : > { %p3864_p11 = pnand %p3157_p9, %p4628_p1 }
  0x17   : > { %p3878_p13 = pneg %p3864_p11 }
  0x1a   : > { %s3570_s17 = scalar_lea.hbm %s4638_s1, 8192 }
  0x1b   : > { %p3571_p12 = scmp.ne.s32.totalorder %s4638_s1, %s3570_s17  ;;  %p3577_p5 = scmp.lt.u32.totalorder %s3570_s17, %s4638_s1 }
  0x1d   : > { %p3573_p0 = pnand %p3878_p13, %p3571_p12 }
  0x1f   : > { %p3574_p3 = pneg %p3573_p0 }
  0x21   : > { %p3579_p7 = pnand %p3577_p5, %p3574_p3 }
  0x23   : > { %3582 = shalt.err (!%p3579_p7)
}
  0x24   : > { %s3583_s23 = scalar_lea.vmem %s3857_s11, 8192  ;;  %p3591_p2 = scmp.lt.s32.totalorder %s3857_s11, %s3857_s11 }
  0x25   : > { %p3584_p9 = scmp.ne.s32.totalorder %s3857_s11, %s3583_s23  ;;  %p3592_p6 = scmp.lt.s32.totalorder %s3583_s23, %s3583_s23 }
  0x27   : > { %p3586_p10 = pnand %p3584_p9, %p3878_p13  ;;  %p3593_p12 = por %p3592_p6, %p3591_p2 }
  0x29   : > { %p3587_p1 = pneg %p3586_p10 }
  0x2b   : > { %p3594_p0 = pnand %p3593_p12, %p3587_p1 }
  0x2d   : > { %3597 = shalt.err (!%p3594_p0)
}
  0x2e   : > { %s3762_s29 = smov 128   ;;  %s3763_s10 = smov 8  }
  0x2f   : > { %3160 = dma.hbm_to_vmem [thread:$0]  (!%p3864_p11), %s4638_s1, 8192, %s3857_s11, [#allocation6], %s3762_s29, %s3762_s29, %s3763_s10  }
  0x30   : > { %s3598_s18 = scalar_lea.hbm %s4623_s3, 2048 }
  0x31   : > { %p3599_p2 = scmp.ne.s32.totalorder %s4623_s3, %s3598_s18  ;;  %p3605_p10 = scmp.lt.u32.totalorder %s3598_s18, %s4623_s3 }
  0x33   : > { %p3601_p1 = pnand %p3599_p2, %p3878_p13 }
  0x35   : > { %p3602_p6 = pneg %p3601_p1 }
  0x37   : > { %p3607_p3 = pnand %p3605_p10, %p3602_p6 }
  0x39   : > { %3610 = shalt.err (!%p3607_p3)
}
  0x3a   : > { %s3611_s11 = scalar_lea.vmem %s3868_s14, 2048  ;;  %p3619_p12 = scmp.lt.s32.totalorder %s3868_s14, %s3868_s14 }
  0x3b   : > { %p3612_p5 = scmp.ne.s32.totalorder %s3868_s14, %s3611_s11  ;;  %p3620_p0 = scmp.lt.s32.totalorder %s3611_s11, %s3611_s11 }
  0x3d   : > { %p3614_p7 = pnand %p3612_p5, %p3878_p13  ;;  %p3621_p2 = por %p3620_p0, %p3619_p12 }
  0x3f   : > { %p3615_p9 = pneg %p3614_p7 }
  0x41   : > { %p3622_p1 = pnand %p3621_p2, %p3615_p9 }
  0x43   : > { %3625 = shalt.err (!%p3622_p1)
}
  0x44   : > { %s3764_s29 = smov 64   ;;  %s3765_s10 = smov 4  }
  0x45   : > { %3163 = dma.hbm_to_vmem [thread:$0]  (!%p3864_p11), %s4623_s3, 2048, %s3868_s14, [#allocation6], %s3764_s29, %s3764_s29, %s3765_s10  }
  0x46   : > { %s3766_s16 = smov [#allocation8]   ;;  %s3923_s18 = sadd.s32 1, %s3758_s27  }
  0x47   : > { %s252_s17 = sshll.u32 %s3766_s16, 4  ;;  %s3626_s22 = scalar_lea.hbm %s4625_s5, 1024  ;;  %s253_s17 = int_to_ptr.vmem [resolvable:$true] %s252_s17 }
  0x48   : > { %p3627_p6 = scmp.ne.s32.totalorder %s4625_s5, %s3626_s22  ;;  %p3633_p5 = scmp.lt.u32.totalorder %s3626_s22, %s4625_s5 }
  0x4a   : > { %p3629_p10 = pnand %p3627_p6, %p3878_p13 }
  0x4c   : > { %p3630_p3 = pneg %p3629_p10 }
  0x4e   : > { %p3635_p7 = pnand %p3633_p5, %p3630_p3 }
  0x50   : > { %3638 = shalt.err (!%p3635_p7)
}
  0x51   : > { %s3639_s14 = scalar_lea.vmem %s253_s17, 1024  ;;  %p3647_p2 = scmp.lt.s32.totalorder %s253_s17, %s253_s17 }
  0x52   : > { %p3640_p9 = scmp.ne.s32.totalorder %s253_s17, %s3639_s14  ;;  %p3648_p1 = scmp.lt.s32.totalorder %s3639_s14, %s3639_s14 }
  0x54   : > { %p3642_p12 = pnand %p3640_p9, %p3878_p13  ;;  %p3649_p4 = por %p3648_p1, %p3647_p2 }
  0x56   : > { %p3643_p0 = pneg %p3642_p12 }
  0x58   : > { %p3650_p8 = pnand %p3649_p4, %p3643_p0 }
  0x5a   : > { %3653 = shalt.err (!%p3650_p8)
}
  0x5b   : > { %3166 = dma.hbm_to_vmem [thread:$0]  (!%p3864_p11), %s4625_s5, 1024, %s253_s17, [#allocation9], %s3764_s29, %s3764_s29, %s3765_s10  }
  0x5c   : > { %s29_s1 = ssub.s32 %s3758_s27, %s3923_s18  ;;  %s32_s8 = sadd.s32 1, %s3754_s26 }
  0x5d   : > { %p30_p4 = scmp.eq.s32.totalorder %s29_s1, 0  ;;  %p39_p8 = scmp.ne.s32.totalorder %s3754_s26, %s3750_s25 }
  0x5e   : > { %p40_p13 = scmp.eq.s32.totalorder %s3758_s27, 0  ;;  %p3178_p6 = scmp.lt.s32.totalorder %s3758_s27, 2 }
  0x5f   : > { %s3951_s12 = scalar_select %p30_p4, %s3754_s26, %s32_s8  }
  0x60   : > { %p41_p10 = por %p40_p13, %p39_p8  ;;  %p4640_p3 = scmp.eq.s32.totalorder %s3834_s28, 1 }
  0x61   : > { %s269_s16 = sand.u32 1, %s3754_s26   ;;  %s2795_s19 = sshll.u32 %s3758_s27, 13 }
  0x62   : > { %p3955_p5 = por %p4640_p3, %p39_p8  ;;  %s2625_s21 = sshll.u32 %s269_s16, 9 }
  0x63   : > { %s3964_s29 = scalar_lea.hbm %s4620_s0, %s2795_s19  ;;  %s273_s10 = scalar_lea.vmem [#allocation2], %s2625_s21 }
  0x64   : > { %s281_s17 = sshll.u32 %s273_s10, 4  ;;  %p3966_p11 = pnand %p3178_p6, %p41_p10  ;;  %s3970_s17 = int_to_ptr.vmem [resolvable:$true] %s281_s17 }
  0x65   : > { %s3972_s14 = scalar_lea.sflag [#allocation3], %s269_s16  ;;  %s3654_s13 = scalar_lea.hbm %s3964_s29, 8192 }
  0x66   : > { %p3655_p7 = scmp.ne.s32.totalorder %s3964_s29, %s3654_s13  ;;  %p3656_p9 = pneg %p3966_p11 }
  0x67   : > { %s3659_s8 = scalar_lea.hbm %s4620_s0, 16384  ;;  %p3660_p2 = scmp.lt.u32.totalorder %s3964_s29, %s4620_s0 }
  0x68   : > { %p3657_p12 = pnand %p3656_p9, %p3655_p7  ;;  %p3661_p1 = scmp.lt.u32.totalorder %s3659_s8, %s3654_s13 }
  0x69   : > { %p3663_p8 = scmp.lt.u32.totalorder %s3654_s13, %s3964_s29 }
  0x6a   : > { %p3658_p0 = pneg %p3657_p12  ;;  %p3662_p4 = por %p3661_p1, %p3660_p2 }
  0x6c   : > { %p3664_p13 = por %p3663_p8, %p3662_p4 }
  0x6e   : > { %p3665_p6 = pnand %p3664_p13, %p3658_p0 }
  0x70   : > { %3668 = shalt.err (!%p3665_p6)
}
  0x71   : > { %s3669_s16 = scalar_lea.vmem %s3970_s17, 8192  ;;  %s3767_s22 = smov [#allocation2]  }
  0x72   : > { %p3670_p10 = scmp.ne.s32.totalorder %s3970_s17, %s3669_s16  ;;  %s3674_s23 = sshll.u32 %s3767_s22, 4  ;;  %s3675_s23 = int_to_ptr.vmem [resolvable:$false] %s3674_s23 }
  0x73   : > { %s3676_s10 = scalar_lea.vmem %s3675_s23, 16384  ;;  %p3677_p12 = scmp.lt.s32.totalorder %s3970_s17, %s3675_s23 }
  0x74   : > { %p3672_p3 = pnand %p3670_p10, %p3656_p9  ;;  %p3678_p2 = scmp.lt.s32.totalorder %s3676_s10, %s3669_s16 }
  0x76   : > { %p3673_p7 = pneg %p3672_p3  ;;  %p3679_p1 = por %p3678_p2, %p3677_p12 }
  0x78   : > { %p3680_p4 = pnand %p3679_p1, %p3673_p7 }
  0x7a   : > { %3683 = shalt.err (!%p3680_p4)
}
  0x7b   : > { %s3768_s13 = smov 256   ;;  %s3769_s15 = smov 16  }
  0x7c   : > { %3170 = dma.hbm_to_vmem [thread:$0]  (!%p3966_p11), %s3964_s29, 8192, %s3970_s17, %s3972_s14, %s3768_s13, %s3768_s13, %s3769_s15  }
  0x7d   : > { %p4643_p9 = scmp.ne.s32.totalorder %s4636_s9, 0 }
  0x7e   : > { %s4003_s1 = sand.u32 (!%p4643_p9), 1, %s3750_s25   ;;  %p4644_p0 = scmp.ne.s32.totalorder (!%p4643_p9), %s4633_s30, 0 }
  0x7f   : > { %293 = sbr.rel (%p4643_p9) target bundleno = 1416 (0x588), region = 48  ;;  %s2630_s8 = sshll.u32 (!%p4643_p9), %s4003_s1, 9 }
  0x80   : > { %s296_s19 = scalar_lea.sflag (!%p4643_p9), [#allocation3], %s4003_s1  ;;  %s4007_s21 = scalar_lea.vmem (!%p4643_p9), [#allocation2], %s2630_s8 }
  0x86   : > { %3729 = dma.done.wait (%p4644_p0), %s296_s19, 8192  }
  0x87   : > { %3731 = vsyncadd (%p4644_p0), %s296_s19, 4294959104  ;;  %p4645_p11 = scmp.eq.s32.totalorder %s3834_s28, 0 }
  0x89   : > { %3733 = dma.done.wait (%p4645_p11), [#allocation6], 10240   ;;  %p4646_p8 = pmov %p4645_p11 }
  0x8b   : > { %3735 = vsyncadd (%p4646_p8), [#allocation6], 4294957056  ;;  %p4647_p13 = pmov %p4646_p8 }
  0x8c   : > { %p4648_p6 = pmov %p4646_p8 }
  0x8d   : > { %3737 = dma.done.wait (%p4647_p13), [#allocation9], 1024  }
  0x8e   : > { %3739 = vsyncadd (%p4648_p6), [#allocation9], 4294966272  ;;  %v3226_v0 = vld [vmem:[#allocation5 + $0x4] ss:$8 sps:$4 sm:$0xff]   ;;  %v3228_v1 = vld [vmem:[#allocation5] ss:$8 sps:$4 sm:$0xff]  }
  0x8f   : > { %1125 = vmatprep.subr.bf16.mxu0 %v3226_v0  ;;  %v3229_v2 = vld [vmem:[#allocation5 + $0x14] ss:$8 sps:$4 sm:$0xff]   ;;  %2981 = vmatprep.subr.bf16.mxu1 %v3226_v0  ;;  %v3231_v3 = vld [vmem:[#allocation5 + $0x10] ss:$8 sps:$4 sm:$0xff]   ;;  %v3232_v4 = vld [vmem:[#allocation5 + $0x24] ss:$8 sps:$4 sm:$0xff]  }
  0x90   : > { %1126 = vmatpush1.bf16.msra.mxu0 %v3228_v1  ;;  %2997 = vmatpush1.bf16.msra.mxu1 %v3228_v1  ;;  %v3234_v5 = vld [vmem:[#allocation5 + $0x20] ss:$8 sps:$4 sm:$0xff]   ;;  %v3235_v6 = vld [vmem:[#allocation5 + $0x34] ss:$8 sps:$4 sm:$0xff]   ;;  %v3237_v7 = vld [vmem:[#allocation5 + $0x30] ss:$8 sps:$4 sm:$0xff]  }
  0x91   : > { %1127 = vmatprep.subr.bf16.mxu0 %v3229_v2  ;;  %2982 = vmatprep.subr.bf16.mxu1 %v3229_v2  ;;  %v3238_v8 = vld [vmem:[#allocation5 + $0x44] ss:$8 sps:$4 sm:$0xff]   ;;  %v3240_v9 = vld [vmem:[#allocation5 + $0x40] ss:$8 sps:$4 sm:$0xff]   ;;  %v3241_v10 = vld [vmem:[#allocation5 + $0x54] ss:$8 sps:$4 sm:$0xff]  }
  0x92   : > { %v3243_v11 = vld [vmem:[#allocation5 + $0x50] ss:$8 sps:$4 sm:$0xff]   ;;  %v3244_v12 = vld [vmem:[#allocation5 + $0x64] ss:$8 sps:$4 sm:$0xff]   ;;  %v3246_v14 = vld [vmem:[#allocation5 + $0x60] ss:$8 sps:$4 sm:$0xff]  }
  0x93   : > { %v3276_v13 = vld [vmem:[%s4007_s21 + $0x4] ss:$16 sps:$4 sm:$0xff]   ;;  %v3249_v16 = vld [vmem:[#allocation5 + $0x70] ss:$8 sps:$4 sm:$0xff]   ;;  %v3252_v18 = vld [vmem:[#allocation5 + $0x80] ss:$8 sps:$4 sm:$0xff]  }
  0x94   : > { %1128 = vmatpush1.bf16.msra.mxu0 %v3231_v3  ;;  %2998 = vmatpush1.bf16.msra.mxu1 %v3231_v3  ;;  %v3247_v15 = vld [vmem:[#allocation5 + $0x74] ss:$8 sps:$4 sm:$0xff]   ;;  %v3250_v17 = vld [vmem:[#allocation5 + $0x84] ss:$8 sps:$4 sm:$0xff]   ;;  %v3255_v20 = vld [vmem:[#allocation5 + $0x90] ss:$8 sps:$4 sm:$0xff]  }
  0x95   : > { %1129 = vmatprep.subr.bf16.mxu0 %v3232_v4  ;;  %2983 = vmatprep.subr.bf16.mxu1 %v3232_v4  ;;  %v3253_v19 = vld [vmem:[#allocation5 + $0x94] ss:$8 sps:$4 sm:$0xff]   ;;  %v3256_v21 = vld [vmem:[#allocation5 + $0xa4] ss:$8 sps:$4 sm:$0xff]   ;;  %v3258_v22 = vld [vmem:[#allocation5 + $0xa0] ss:$8 sps:$4 sm:$0xff]  }
  0x96   : > { %1157 = vmatprep.mubr.bf16.mxu0 %v3276_v13  ;;  %v3259_v23 = vld [vmem:[#allocation5 + $0xb4] ss:$8 sps:$4 sm:$0xff]   ;;  %v3261_v24 = vld [vmem:[#allocation5 + $0xb0] ss:$8 sps:$4 sm:$0xff]   ;;  %v3262_v25 = vld [vmem:[#allocation5 + $0xc4] ss:$8 sps:$4 sm:$0xff]  }
  0x97   : > { %v3264_v26 = vld [vmem:[#allocation5 + $0xc0] ss:$8 sps:$4 sm:$0xff]   ;;  %v3265_v27 = vld [vmem:[#allocation5 + $0xd4] ss:$8 sps:$4 sm:$0xff]   ;;  %v3267_v28 = vld [vmem:[#allocation5 + $0xd0] ss:$8 sps:$4 sm:$0xff]  }
  0x98   : > { %1130 = vmatpush1.bf16.msra.mxu0 %v3234_v5  ;;  %2999 = vmatpush1.bf16.msra.mxu1 %v3234_v5  ;;  %v3268_v29 = vld [vmem:[#allocation5 + $0xe4] ss:$8 sps:$4 sm:$0xff]   ;;  %v3270_v30 = vld [vmem:[#allocation5 + $0xe0] ss:$8 sps:$4 sm:$0xff]   ;;  %v3271_v31 = vld [vmem:[#allocation5 + $0xf4] ss:$8 sps:$4 sm:$0xff]  }
  0x99   : > { %1131 = vmatprep.subr.bf16.mxu0 %v3235_v6  ;;  %2984 = vmatprep.subr.bf16.mxu1 %v3235_v6  ;;  %v3273_v32 = vld [vmem:[#allocation5 + $0xf0] ss:$8 sps:$4 sm:$0xff]   ;;  %v3279_v33 = vld [vmem:[#allocation5 + $0x104] ss:$8 sps:$4 sm:$0xff]   ;;  %v3277_v35 = vld [vmem:[#allocation5 + $0x100] ss:$8 sps:$4 sm:$0xff]  }
  0x9a   : > { %v3274_v34 = vld [vmem:[%s4007_s21] ss:$16 sps:$4 sm:$0xff]   ;;  %v3283_v36 = vld [vmem:[%s4007_s21 + $0x24] ss:$16 sps:$4 sm:$0xff]   ;;  %s2634_s16 = sshll.u32 %s4003_s1, 8  ;;  %s2796_s23 = sshll.u32 %s3834_s28, 12 }
  0x9b   : > { %v3282_v37 = vld [vmem:[#allocation5 + $0x114] ss:$8 sps:$4 sm:$0xff]   ;;  %v3280_v38 = vld [vmem:[#allocation5 + $0x110] ss:$8 sps:$4 sm:$0xff]   ;;  %v3288_v39 = vld [vmem:[#allocation5 + $0x124] ss:$8 sps:$4 sm:$0xff]   ;;  %s4571_s8 = scalar_lea.hbm %s4627_s7, %s2796_s23 }
  0x9c   : > { %1132 = vmatpush1.bf16.msra.mxu0 %v3237_v7  ;;  %3000 = vmatpush1.bf16.msra.mxu1 %v3237_v7  ;;  %v3285_v40 = vld [vmem:[%s4007_s21 + $0x20] ss:$16 sps:$4 sm:$0xff]   ;;  %v3289_v42 = vld [vmem:[%s4007_s21 + $0x44] ss:$16 sps:$4 sm:$0xff]   ;;  %s4504_s22 = scalar_lea.vmem [#allocation10], %s2634_s16  ;;  %s2504_s28 = scalar_lea.sflag [#allocation4], %s4003_s1 }
  0x9d   : > { %1133 = vmatprep.subr.bf16.mxu0 %v3238_v8  ;;  %2985 = vmatprep.subr.bf16.mxu1 %v3238_v8  ;;  %v3286_v41 = vld [vmem:[#allocation5 + $0x120] ss:$8 sps:$4 sm:$0xff]   ;;  %v3294_v43 = vld [vmem:[#allocation5 + $0x134] ss:$8 sps:$4 sm:$0xff]   ;;  %v3292_v44 = vld [vmem:[#allocation5 + $0x130] ss:$8 sps:$4 sm:$0xff]  }
  0x9e   : > { %v3300_v45 = vld [vmem:[#allocation5 + $0x144] ss:$8 sps:$4 sm:$0xff]   ;;  %v3291_v46 = vld [vmem:[%s4007_s21 + $0x40] ss:$16 sps:$4 sm:$0xff]   ;;  %v3303_v49 = vld [vmem:[#allocation5 + $0x154] ss:$8 sps:$4 sm:$0xff]  }
  0x9f   : > { %v3295_v47 = vld [vmem:[%s4007_s21 + $0x64] ss:$16 sps:$4 sm:$0xff]   ;;  %v3298_v48 = vld [vmem:[#allocation5 + $0x140] ss:$8 sps:$4 sm:$0xff]   ;;  %v3301_v50 = vld [vmem:[#allocation5 + $0x150] ss:$8 sps:$4 sm:$0xff]  }
  0xa0   : > { %1134 = vmatpush1.bf16.msra.mxu0 %v3240_v9  ;;  %3001 = vmatpush1.bf16.msra.mxu1 %v3240_v9  ;;  %v3309_v51 = vld [vmem:[#allocation5 + $0x164] ss:$8 sps:$4 sm:$0xff]   ;;  %v3297_v52 = vld [vmem:[%s4007_s21 + $0x60] ss:$16 sps:$4 sm:$0xff]   ;;  %v3315_v55 = vld [vmem:[#allocation5 + $0x174] ss:$8 sps:$4 sm:$0xff]  }
  0xa1   : > { %1135 = vmatprep.subr.bf16.mxu0 %v3241_v10  ;;  %2986 = vmatprep.subr.bf16.mxu1 %v3241_v10  ;;  %v3304_v53 = vld [vmem:[%s4007_s21 + $0x84] ss:$16 sps:$4 sm:$0xff]   ;;  %v3307_v54 = vld [vmem:[#allocation5 + $0x160] ss:$8 sps:$4 sm:$0xff]   ;;  %v3313_v56 = vld [vmem:[#allocation5 + $0x170] ss:$8 sps:$4 sm:$0xff]  }
  0xa2   : > { %v3321_v57 = vld [vmem:[#allocation5 + $0x184] ss:$8 sps:$4 sm:$0xff]   ;;  %v3306_v58 = vld [vmem:[%s4007_s21 + $0x80] ss:$16 sps:$4 sm:$0xff]   ;;  %v3324_v61 = vld [vmem:[#allocation5 + $0x194] ss:$8 sps:$4 sm:$0xff]  }
  0xa3   : > { %v3310_v59 = vld [vmem:[%s4007_s21 + $0xa4] ss:$16 sps:$4 sm:$0xff]   ;;  %v3319_v60 = vld [vmem:[#allocation5 + $0x180] ss:$8 sps:$4 sm:$0xff]   ;;  %v3322_v62 = vld [vmem:[#allocation5 + $0x190] ss:$8 sps:$4 sm:$0xff]  }
  0xa4   : > { %1136 = vmatpush1.bf16.msra.mxu0 %v3243_v11  ;;  %3002 = vmatpush1.bf16.msra.mxu1 %v3243_v11  ;;  %v3330_v63 = vld [vmem:[#allocation5 + $0x1a4] ss:$8 sps:$4 sm:$0xff]   ;;  %v3312_v0 = vld [vmem:[%s4007_s21 + $0xa0] ss:$16 sps:$4 sm:$0xff]   ;;  %v3336_v3 = vld [vmem:[#allocation5 + $0x1b4] ss:$8 sps:$4 sm:$0xff]  }
  0xa5   : > { %1137 = vmatprep.subr.bf16.mxu0 %v3244_v12  ;;  %2987 = vmatprep.subr.bf16.mxu1 %v3244_v12  ;;  %v3316_v1 = vld [vmem:[%s4007_s21 + $0xc4] ss:$16 sps:$4 sm:$0xff]   ;;  %v3328_v2 = vld [vmem:[#allocation5 + $0x1a0] ss:$8 sps:$4 sm:$0xff]   ;;  %v3334_v4 = vld [vmem:[#allocation5 + $0x1b0] ss:$8 sps:$4 sm:$0xff]  }
  0xa6   : > { %v3342_v5 = vld [vmem:[#allocation5 + $0x1c4] ss:$8 sps:$4 sm:$0xff]   ;;  %v3318_v6 = vld [vmem:[%s4007_s21 + $0xc0] ss:$16 sps:$4 sm:$0xff]   ;;  %v3345_v9 = vld [vmem:[#allocation5 + $0x1d4] ss:$8 sps:$4 sm:$0xff]  }
  0xa7   : > { %v3325_v7 = vld [vmem:[%s4007_s21 + $0xe4] ss:$16 sps:$4 sm:$0xff]   ;;  %v3340_v8 = vld [vmem:[#allocation5 + $0x1c0] ss:$8 sps:$4 sm:$0xff]   ;;  %v3343_v10 = vld [vmem:[#allocation5 + $0x1d0] ss:$8 sps:$4 sm:$0xff]  }
  0xa8   : > { %1138 = vmatpush1.bf16.msra.mxu0 %v3246_v14  ;;  %3003 = vmatpush1.bf16.msra.mxu1 %v3246_v14  ;;  %v3351_v11 = vld [vmem:[#allocation5 + $0x1e4] ss:$8 sps:$4 sm:$0xff]   ;;  %v3327_v12 = vld [vmem:[%s4007_s21 + $0xe0] ss:$16 sps:$4 sm:$0xff]   ;;  %s2517_s10 = sshll.u32 %s4504_s22, 4  ;;  %s4573_s10 = int_to_ptr.vmem [resolvable:$true] %s2517_s10 }
  0xa9   : > { %1139 = vmatprep.subr.bf16.mxu0 %v3247_v15  ;;  %2988 = vmatprep.subr.bf16.mxu1 %v3247_v15  ;;  %v3331_v13 = vld [vmem:[%s4007_s21 + $0x104] ss:$16 sps:$4 sm:$0xff]   ;;  %v3349_v14 = vld [vmem:[#allocation5 + $0x1e0] ss:$8 sps:$4 sm:$0xff]   ;;  %s3684_s19 = scalar_lea.vmem %s4573_s10, 4096 }
  0xaa   : > { %v3357_v15 = vld [vmem:[#allocation5 + $0x1f4] ss:$8 sps:$4 sm:$0xff]   ;;  %p3685_p10 = scmp.ne.s32.totalorder %s4573_s10, %s3684_s19 }
  0xac   : > { %1140 = vmatpush1.bf16.msra.mxu0 %v3249_v16  ;;  %3004 = vmatpush1.bf16.msra.mxu1 %v3249_v16  ;;  %v3394_v16 = vld [vmem:[%s4007_s21 + $0x180] ss:$16 sps:$4 sm:$0xff]   ;;  %p3686_p3 = pnand %p3685_p10, %p3955_p5 }
  0xad   : > { %1141 = vmatprep.subr.bf16.mxu0 %v3250_v17  ;;  %2989 = vmatprep.subr.bf16.mxu1 %v3250_v17  ;;  %v3396_v17 = vld [vmem:[%s4007_s21 + $0x184] ss:$16 sps:$4 sm:$0xff]  }
  0xae   : > { %1277 = vmatprep.mubr.bf16.mxu1 %v3396_v17  ;;  %p3687_p7 = pneg %p3686_p3 }
  0xb0   : > { %1142 = vmatpush1.bf16.msra.mxu0 %v3252_v18  ;;  %3005 = vmatpush1.bf16.msra.mxu1 %v3252_v18  ;;  %v3355_v18 = vld [vmem:[#allocation5 + $0x1f0] ss:$8 sps:$4 sm:$0xff]  }
  0xb1   : > { %1143 = vmatprep.subr.bf16.mxu0 %v3253_v19  ;;  %2990 = vmatprep.subr.bf16.mxu1 %v3253_v19  ;;  %v3333_v19 = vld [vmem:[%s4007_s21 + $0x100] ss:$16 sps:$4 sm:$0xff]  }
  0xb4   : > { %1144 = vmatpush1.bf16.msra.mxu0 %v3255_v20  ;;  %3006 = vmatpush1.bf16.msra.mxu1 %v3255_v20  ;;  %v3337_v20 = vld [vmem:[%s4007_s21 + $0x124] ss:$16 sps:$4 sm:$0xff]  }
  0xb5   : > { %1145 = vmatprep.subr.bf16.mxu0 %v3256_v21  ;;  %2991 = vmatprep.subr.bf16.mxu1 %v3256_v21  ;;  %v3400_v21 = vld [vmem:[%s4007_s21 + $0x1a4] ss:$16 sps:$4 sm:$0xff]  }
  0xb8   : > { %1146 = vmatpush1.bf16.msra.mxu0 %v3258_v22  ;;  %3007 = vmatpush1.bf16.msra.mxu1 %v3258_v22  ;;  %v3402_v22 = vld [vmem:[%s4007_s21 + $0x1a0] ss:$16 sps:$4 sm:$0xff]  }
  0xb9   : > { %1147 = vmatprep.subr.bf16.mxu0 %v3259_v23  ;;  %2992 = vmatprep.subr.bf16.mxu1 %v3259_v23  ;;  %v3339_v23 = vld [vmem:[%s4007_s21 + $0x120] ss:$16 sps:$4 sm:$0xff]  }
  0xbc   : > { %1148 = vmatpush1.bf16.msra.mxu0 %v3261_v24  ;;  %3008 = vmatpush1.bf16.msra.mxu1 %v3261_v24  ;;  %v3346_v24 = vld [vmem:[%s4007_s21 + $0x144] ss:$16 sps:$4 sm:$0xff]  }
  0xbd   : > { %1149 = vmatprep.subr.bf16.mxu0 %v3262_v25  ;;  %2993 = vmatprep.subr.bf16.mxu1 %v3262_v25  ;;  %v3406_v25 = vld [vmem:[%s4007_s21 + $0x1c4] ss:$16 sps:$4 sm:$0xff]  }
  0xc0   : > { %1150 = vmatpush1.bf16.msra.mxu0 %v3264_v26  ;;  %3009 = vmatpush1.bf16.msra.mxu1 %v3264_v26  ;;  %v3408_v26 = vld [vmem:[%s4007_s21 + $0x1c0] ss:$16 sps:$4 sm:$0xff]  }
  0xc1   : > { %1151 = vmatprep.subr.bf16.mxu0 %v3265_v27  ;;  %2994 = vmatprep.subr.bf16.mxu1 %v3265_v27  ;;  %v3348_v27 = vld [vmem:[%s4007_s21 + $0x140] ss:$16 sps:$4 sm:$0xff]  }
  0xc4   : > { %1152 = vmatpush1.bf16.msra.mxu0 %v3267_v28  ;;  %3010 = vmatpush1.bf16.msra.mxu1 %v3267_v28  ;;  %v3352_v28 = vld [vmem:[%s4007_s21 + $0x164] ss:$16 sps:$4 sm:$0xff]  }
  0xc5   : > { %1153 = vmatprep.subr.bf16.mxu0 %v3268_v29  ;;  %2995 = vmatprep.subr.bf16.mxu1 %v3268_v29  ;;  %v3412_v29 = vld [vmem:[%s4007_s21 + $0x1e4] ss:$16 sps:$4 sm:$0xff]  }
  0xc8   : > { %1154 = vmatpush1.bf16.msra.mxu0 %v3270_v30  ;;  %3011 = vmatpush1.bf16.msra.mxu1 %v3270_v30  ;;  %v3414_v30 = vld [vmem:[%s4007_s21 + $0x1e0] ss:$16 sps:$4 sm:$0xff]  }
  0xc9   : > { %1155 = vmatprep.subr.bf16.mxu0 %v3271_v31  ;;  %2996 = vmatprep.subr.bf16.mxu1 %v3271_v31  ;;  %v3354_v31 = vld [vmem:[%s4007_s21 + $0x160] ss:$16 sps:$4 sm:$0xff]  }
  0xcc   : > { %1156 = vmatpush1.bf16.msra.mxu0 %v3273_v32  ;;  %3012 = vmatpush1.bf16.msra.mxu1 %v3273_v32  ;;  %v3360_v32 = vld [vmem:[%s4007_s21 + $0xc] ss:$16 sps:$4 sm:$0xff]  }
  0xcd   : > { %1318 = vmatprep.subr.bf16.mxu0 %v3279_v33  ;;  %v3418_v33 = vld [vmem:[#allocation7 + $0x40] sm:$0xff]  }
  0xce   : > { %2797 = vmatprep.subr.bf16.mxu1 %v3418_v33 }
  0xcf   : > { %1158 = vmatmul.mubr.bf16.vlgmr.msra.gmra.mrb[0].mxu0 %v3274_v34  ;;  %1278 = vmatmul.mubr.bf16.vlgmr.msra.gmra.mrb[0].mxu1 %v3394_v16  ;;  %v3419_v34 = vld [vmem:[#allocation7] sm:$0xff]  }
  0xd0   : > { %1319 = vmatpush1.bf16.msra.mxu0 %v3277_v35  ;;  %1167 = vmatprep.mubr.bf16.mxu0 %v3283_v36  ;;  %v3420_v35 = vld [vmem:[#allocation7 + $0x48] sm:$0xff]  }
  0xd1   : > { %1320 = vmatprep.subr.bf16.mxu0 %v3282_v37  ;;  %1287 = vmatprep.mubr.bf16.mxu1 %v3400_v21  ;;  %v3421_v36 = vld [vmem:[#allocation7 + $0x8] sm:$0xff]  }
  0xd2   : > { %2798 = vmatpush3.bf16.msra.mxu1 %v3419_v34  ;;  %v3358_v37 = vld [vmem:[%s4007_s21 + $0x8] ss:$16 sps:$4 sm:$0xff]  }
  0xd3   : > { %2799 = vmatprep.subr.bf16.mxu1 %v3420_v35  ;;  %v473_v35 = vld [vmem:[%s4622_s2] sm:$0x3] }
  0xd4   : > { %1321 = vmatpush1.bf16.msra.mxu0 %v3280_v38  ;;  %v3422_v38 = vld [vmem:[#allocation7 + $0x50] sm:$0xff]  }
  0xd5   : > { %1322 = vmatprep.subr.bf16.mxu0 %v3288_v39  ;;  %v3361_v39 = vld [vmem:[%s4007_s21 + $0x2c] ss:$16 sps:$4 sm:$0xff]  }
  0xd6   : > { %2800 = vmatpush3.bf16.msra.mxu1 %v3421_v36 }
  0xd7   : > { %1168 = vmatmul.mubr.bf16.gmra.mrb[4].mxu0 %v3285_v40  ;;  %1288 = vmatmul.mubr.bf16.gmra.mrb[4].mxu1 %v3402_v22  ;;  %v3423_v40 = vld [vmem:[#allocation7 + $0x10] sm:$0xff]  }
  0xd8   : > { %1323 = vmatpush1.bf16.msra.mxu0 %v3286_v41  ;;  %1177 = vmatprep.mubr.bf16.mxu0 %v3289_v42  ;;  %v3424_v41 = vld [vmem:[#allocation7 + $0x58] sm:$0xff]  }
  0xd9   : > { %1324 = vmatprep.subr.bf16.mxu0 %v3294_v43  ;;  %1297 = vmatprep.mubr.bf16.mxu1 %v3406_v25  ;;  %v3425_v42 = vld [vmem:[#allocation7 + $0x18] sm:$0xff]  }
  0xda   : > { %2801 = vmatprep.subr.bf16.mxu1 %v3422_v38  ;;  %v3363_v43 = vld [vmem:[%s4007_s21 + $0x28] ss:$16 sps:$4 sm:$0xff]  }
  0xdb   : > { %2802 = vmatpush3.bf16.msra.mxu1 %v3423_v40 }
  0xdc   : > { %1325 = vmatpush1.bf16.msra.mxu0 %v3292_v44  ;;  %2803 = vmatprep.subr.bf16.mxu1 %v3424_v41  ;;  %v3426_v44 = vld [vmem:[#allocation7 + $0x60] sm:$0xff]  }
  0xdd   : > { %1326 = vmatprep.subr.bf16.mxu0 %v3300_v45  ;;  %v3364_v45 = vld [vmem:[%s4007_s21 + $0x4c] ss:$16 sps:$4 sm:$0xff]  }
  0xdf   : > { %1178 = vmatmul.mubr.bf16.gmra.mrb[8].mxu0 %v3291_v46  ;;  %1298 = vmatmul.mubr.bf16.gmra.mrb[8].mxu1 %v3408_v26  ;;  %v3427_v46 = vld [vmem:[#allocation7 + $0x20] sm:$0xff]  }
  0xe0   : > { %1187 = vmatprep.mubr.bf16.mxu0 %v3295_v47  ;;  %1327 = vmatpush1.bf16.msra.mxu0 %v3298_v48  ;;  %v3428_v47 = vld [vmem:[#allocation7 + $0x68] sm:$0xff]  }
  0xe1   : > { %1328 = vmatprep.subr.bf16.mxu0 %v3303_v49  ;;  %1307 = vmatprep.mubr.bf16.mxu1 %v3412_v29  ;;  %v3366_v48 = vld [vmem:[%s4007_s21 + $0x48] ss:$16 sps:$4 sm:$0xff]   ;;  %v3367_v49 = vld [vmem:[%s4007_s21 + $0x6c] ss:$16 sps:$4 sm:$0xff]  }
  0xe2   : > { %2804 = vmatpush3.bf16.msra.mxu1 %v3425_v42 }
  0xe3   : > { %2805 = vmatprep.subr.bf16.mxu1 %v3426_v44 }
  0xe4   : > { %1329 = vmatpush1.bf16.msra.mxu0 %v3301_v50  ;;  %v3369_v50 = vld [vmem:[%s4007_s21 + $0x68] ss:$16 sps:$4 sm:$0xff]  }
  0xe5   : > { %1330 = vmatprep.subr.bf16.mxu0 %v3309_v51  ;;  %v3370_v51 = vld [vmem:[%s4007_s21 + $0x8c] ss:$16 sps:$4 sm:$0xff]  }
  0xe6   : > { %2806 = vmatpush3.bf16.msra.mxu1 %v3427_v46  ;;  %v3434_v46 = vld [vmem:[#allocation8] sm:$0xff]  }
  0xe7   : > { %1188 = vmatmul.mubr.bf16.gmra.mrb[12].mxu0 %v3297_v52  ;;  %1308 = vmatmul.mubr.bf16.gmra.mrb[12].mxu1 %v3414_v30  ;;  %v3372_v52 = vld [vmem:[%s4007_s21 + $0x88] ss:$16 sps:$4 sm:$0xff]  }
  0xe8   : > { %1197 = vmatprep.mubr.bf16.mxu0 %v3304_v53  ;;  %1331 = vmatpush1.bf16.msra.mxu0 %v3307_v54  ;;  %v3373_v53 = vld [vmem:[%s4007_s21 + $0xac] ss:$16 sps:$4 sm:$0xff]   ;;  %v3375_v54 = vld [vmem:[%s4007_s21 + $0xa8] ss:$16 sps:$4 sm:$0xff]  }
  0xe9   : > { %1332 = vmatprep.subr.bf16.mxu0 %v3315_v55  ;;  %2807 = vmatprep.subr.bf16.mxu1 %v3428_v47  ;;  %v3376_v55 = vld [vmem:[%s4007_s21 + $0xcc] ss:$16 sps:$4 sm:$0xff]  }
  0xec   : > { %1333 = vmatpush1.bf16.msra.mxu0 %v3313_v56  ;;  %v3378_v56 = vld [vmem:[%s4007_s21 + $0xc8] ss:$16 sps:$4 sm:$0xff]  }
  0xed   : > { %1334 = vmatprep.subr.bf16.mxu0 %v3321_v57  ;;  %v3379_v57 = vld [vmem:[%s4007_s21 + $0xec] ss:$16 sps:$4 sm:$0xff]  }
  0xef   : > { %1198 = vmatmul.mubr.bf16.gmra.mrb[16].mxu0 %v3306_v58  ;;  %v3381_v58 = vld [vmem:[%s4007_s21 + $0xe8] ss:$16 sps:$4 sm:$0xff]  }
  0xf0   : > { %1207 = vmatprep.mubr.bf16.mxu0 %v3310_v59  ;;  %1335 = vmatpush1.bf16.msra.mxu0 %v3319_v60  ;;  %v3382_v59 = vld [vmem:[%s4007_s21 + $0x10c] ss:$16 sps:$4 sm:$0xff]   ;;  %v3384_v60 = vld [vmem:[%s4007_s21 + $0x108] ss:$16 sps:$4 sm:$0xff]  }
  0xf1   : > { %1336 = vmatprep.subr.bf16.mxu0 %v3324_v61  ;;  %v3385_v61 = vld [vmem:[%s4007_s21 + $0x12c] ss:$16 sps:$4 sm:$0xff]  }
  0xf4   : > { %1337 = vmatpush1.bf16.msra.mxu0 %v3322_v62  ;;  %v3387_v62 = vld [vmem:[%s4007_s21 + $0x128] ss:$16 sps:$4 sm:$0xff]  }
  0xf5   : > { %1338 = vmatprep.subr.bf16.mxu0 %v3330_v63  ;;  %v3388_v63 = vld [vmem:[%s4007_s21 + $0x14c] ss:$16 sps:$4 sm:$0xff]  }
  0xf7   : > { %1208 = vmatmul.mubr.bf16.gmra.mrb[20].mxu0 %v3312_v0  ;;  %v3390_v0 = vld [vmem:[%s4007_s21 + $0x148] ss:$16 sps:$4 sm:$0xff]  }
  0xf8   : > { %1217 = vmatprep.mubr.bf16.mxu0 %v3316_v1  ;;  %1339 = vmatpush1.bf16.msra.mxu0 %v3328_v2  ;;  %v3391_v1 = vld [vmem:[%s4007_s21 + $0x16c] ss:$16 sps:$4 sm:$0xff]  }
  0xf9   : > { %1340 = vmatprep.subr.bf16.mxu0 %v3336_v3  ;;  %v3429_v2 = vld [vmem:[#allocation7 + $0x28] sm:$0xff]  }
  0xfa   : > { %2808 = vmatpush3.bf16.msra.mxu1 %v3429_v2  ;;  %v3393_v3 = vld [vmem:[%s4007_s21 + $0x168] ss:$16 sps:$4 sm:$0xff]  }
  0xfc   : > { %1341 = vmatpush1.bf16.msra.mxu0 %v3334_v4  ;;  %v3430_v4 = vld [vmem:[#allocation7 + $0x70] sm:$0xff]  }
  0xfd   : > { %1342 = vmatprep.subr.bf16.mxu0 %v3342_v5  ;;  %v3397_v5 = vld [vmem:[%s4007_s21 + $0x18c] ss:$16 sps:$4 sm:$0xff]   ;;  %2809 = vmatprep.subr.bf16.mxu1 %v3430_v4 }
  0xff   : > { %1218 = vmatmul.mubr.bf16.gmra.mrb[24].mxu0 %v3318_v6  ;;  %v3431_v6 = vld [vmem:[#allocation7 + $0x30] sm:$0xff]  }
 0x100   : > { %1227 = vmatprep.mubr.bf16.mxu0 %v3325_v7  ;;  %1343 = vmatpush1.bf16.msra.mxu0 %v3340_v8  ;;  %v3432_v7 = vld [vmem:[#allocation7 + $0x78] sm:$0xff]  }
 0x101   : > { %1344 = vmatprep.subr.bf16.mxu0 %v3345_v9  ;;  %2810 = vmatpush3.bf16.msra.mxu1 %v3431_v6  ;;  %v3433_v8 = vld [vmem:[#allocation7 + $0x38] sm:$0xff]  }
 0x102   : > { %2811 = vmatprep.subr.bf16.mxu1 %v3432_v7  ;;  %v3399_v9 = vld [vmem:[%s4007_s21 + $0x188] ss:$16 sps:$4 sm:$0xff]  }
 0x104   : > { %1345 = vmatpush1.bf16.msra.mxu0 %v3343_v10  ;;  %v3403_v10 = vld [vmem:[%s4007_s21 + $0x1ac] ss:$16 sps:$4 sm:$0xff]  }
 0x105   : > { %1346 = vmatprep.subr.bf16.mxu0 %v3351_v11  ;;  %2812 = vmatpush3.bf16.msra.mxu1 %v3433_v8  ;;  %v3405_v11 = vld [vmem:[%s4007_s21 + $0x1a8] ss:$16 sps:$4 sm:$0xff]  }
 0x106   : > { %2933 = vmatprep.subr.bf16.mxu1 %v3434_v46 }
 0x107   : > { %1228 = vmatmul.mubr.bf16.gmra.mrb[28].mxu0 %v3327_v12  ;;  %v3409_v12 = vld [vmem:[%s4007_s21 + $0x1cc] ss:$16 sps:$4 sm:$0xff]  }
 0x108   : > { %1237 = vmatprep.mubr.bf16.mxu0 %v3331_v13  ;;  %1347 = vmatpush1.bf16.msra.mxu0 %v3349_v14  ;;  %v3411_v13 = vld [vmem:[%s4007_s21 + $0x1c8] ss:$16 sps:$4 sm:$0xff]   ;;  %v3415_v14 = vld [vmem:[%s4007_s21 + $0x1ec] ss:$16 sps:$4 sm:$0xff]  }
 0x109   : > { %1348 = vmatprep.subr.bf16.mxu0 %v3357_v15  ;;  %v3417_v15 = vld [vmem:[%s4007_s21 + $0x1e8] ss:$16 sps:$4 sm:$0xff]   ;;  %s3770_s21 = smov [#allocation10]  }
 0x10a   : > { %s3688_s30 = sshll.u32 %s3770_s21, 4  ;;  %s3689_s30 = int_to_ptr.vmem [resolvable:$false] %s3688_s30 }
 0x10b   : > { %s3690_s9 = scalar_lea.vmem %s3689_s30, 8192  ;;  %p3691_p12 = scmp.lt.s32.totalorder %s4573_s10, %s3689_s30 }
 0x10c   : > { %1349 = vmatpush1.bf16.msra.mxu0 %v3355_v18  ;;  %p3692_p2 = scmp.lt.s32.totalorder %s3690_s9, %s3684_s19 }
 0x10e   : > { %p3693_p1 = por %p3692_p2, %p3691_p12 }
 0x10f   : > { %1238 = vmatmul.mubr.bf16.gmra.mrb[32].mxu0 %v3333_v19 }
 0x110   : > { %1247 = vmatprep.mubr.bf16.mxu0 %v3337_v20  ;;  %p3694_p4 = pnand %p3693_p1, %p3687_p7 }
 0x117   : > { %1248 = vmatmul.mubr.bf16.gmra.mrb[36].mxu0 %v3339_v23 }
 0x118   : > { %1257 = vmatprep.mubr.bf16.mxu0 %v3346_v24 }
 0x11f   : > { %1258 = vmatmul.mubr.bf16.gmra.mrb[40].mxu0 %v3348_v27 }
 0x120   : > { %1267 = vmatprep.mubr.bf16.mxu0 %v3352_v28  ;;  %v475_v28 = vlaneseq }
 0x127   : > { %1268 = vmatmul.mubr.bf16.gmra.mrb[44].mxu0 %v3354_v31  ;;  %v476_v31 = vshrl.u32 %v475_v28, 7 }
 0x128   : > { %1350 = vmatprep.mubr.bf16.mxu0 %v3360_v32 }
 0x129   : > { %v477_v34 = vsub.s32 0, %v476_v31  ;;  %v481_v36 = vsub.s32 1, %v476_v31 }
 0x12b   : > { %v4122_v38 = vrot.slane %v473_v35, %v481_v36 }
 0x12f   : > { %1351 = vmatmul.mubr.bf16.vlgmr.msra.gmra.mrb[0].mxu0 %v3358_v37  ;;  %v4120_v37 = vrot.slane %v473_v35, %v477_v34 }
 0x130   : > { %1360 = vmatprep.mubr.bf16.mxu0 %v3361_v39 }
 0x137   : > { %1361 = vmatmul.mubr.bf16.gmra.mrb[4].mxu0 %v3363_v43 }
 0x138   : > { %1370 = vmatprep.mubr.bf16.mxu0 %v3364_v45 }
 0x13f   : > { %1371 = vmatmul.mubr.bf16.gmra.mrb[8].mxu0 %v3366_v48 }
 0x140   : > { %1380 = vmatprep.mubr.bf16.mxu0 %v3367_v49 }
 0x147   : > { %1381 = vmatmul.mubr.bf16.gmra.mrb[12].mxu0 %v3369_v50 }
 0x148   : > { %1390 = vmatprep.mubr.bf16.mxu0 %v3370_v51 }
 0x14f   : > { %1391 = vmatmul.mubr.bf16.gmra.mrb[16].mxu0 %v3372_v52 }
 0x150   : > { %1400 = vmatprep.mubr.bf16.mxu0 %v3373_v53 }
 0x157   : > { %1401 = vmatmul.mubr.bf16.gmra.mrb[20].mxu0 %v3375_v54 }
 0x158   : > { %1410 = vmatprep.mubr.bf16.mxu0 %v3376_v55 }
 0x15f   : > { %1411 = vmatmul.mubr.bf16.gmra.mrb[24].mxu0 %v3378_v56 }
 0x160   : > { %1420 = vmatprep.mubr.bf16.mxu0 %v3379_v57  ;;  %v3435_v57 = vld [vmem:[#allocation8 + $0x8] sm:$0xff]  }
 0x167   : > { %1421 = vmatmul.mubr.bf16.gmra.mrb[28].mxu0 %v3381_v58 }
 0x168   : > { %1430 = vmatprep.mubr.bf16.mxu0 %v3382_v59 }
 0x16f   : > { %1431 = vmatmul.mubr.bf16.gmra.mrb[32].mxu0 %v3384_v60 }
 0x170   : > { %1440 = vmatprep.mubr.bf16.mxu0 %v3385_v61 }
 0x177   : > { %1441 = vmatmul.mubr.bf16.gmra.mrb[36].mxu0 %v3387_v62 }
 0x178   : > { %1450 = vmatprep.mubr.bf16.mxu0 %v3388_v63 }
 0x17f   : > { %1451 = vmatmul.mubr.bf16.gmra.mrb[40].mxu0 %v3390_v0 }
 0x180   : > { %1460 = vmatprep.mubr.bf16.mxu0 %v3391_v1  ;;  %v3436_v1 = vld [vmem:[#allocation8 + $0x10] sm:$0xff]  }
 0x187   : > { %1461 = vmatmul.mubr.bf16.gmra.mrb[44].mxu0 %v3393_v3 }
 0x188   : > { %1470 = vmatprep.mubr.bf16.mxu0 %v3397_v5 }
 0x18f   : > { %1471 = vmatmul.mubr.bf16.gmra.mrb[48].mxu0 %v3399_v9  ;;  %v3437_v9 = vld [vmem:[#allocation8 + $0x18] sm:$0xff]  }
 0x190   : > { %1480 = vmatprep.mubr.bf16.mxu0 %v3403_v10 }
 0x197   : > { %1481 = vmatmul.mubr.bf16.gmra.mrb[52].mxu0 %v3405_v11 }
 0x198   : > { %1490 = vmatprep.mubr.bf16.mxu0 %v3409_v12 }
 0x19f   : > { %1491 = vmatmul.mubr.bf16.gmra.mrb[56].mxu0 %v3411_v13 }
 0x1a0   : > { %1500 = vmatprep.mubr.bf16.mxu0 %v3415_v14 }
 0x1a2   : > { %v4085_v16 = vpop.f32.mrb[0].mxu1 }
 0x1a3   : > { %v4087_v17 = vpop.f32.mrb[1].mxu1 }
 0x1a4   : > { %v4089_v18 = vpop.f32.mrb[2].mxu1 }
 0x1a5   : > { %v4091_v19 = vpop.f32.mrb[3].mxu1 }
 0x1a7   : > { %1501 = vmatmul.mubr.bf16.gmra.mrb[60].mxu0 %v3417_v15 }
 0x1aa   : > { %v4093_v20 = vpop.f32.mrb[4].mxu1 }
 0x1ab   : > { %v4095_v21 = vpop.f32.mrb[5].mxu1 }
 0x1ac   : > { %v4097_v22 = vpop.f32.mrb[6].mxu1 }
 0x1ad   : > { %v4099_v23 = vpop.f32.mrb[7].mxu1 }
 0x1b2   : > { %v4101_v24 = vpop.f32.mrb[8].mxu1 }
 0x1b3   : > { %v4103_v25 = vpop.f32.mrb[9].mxu1 }
 0x1b4   : > { %v4105_v26 = vpop.f32.mrb[10].mxu1 }
 0x1b5   : > { %v4107_v27 = vpop.f32.mrb[11].mxu1 }
 0x1ba   : > { %v4109_v29 = vpop.f32.mrb[12].mxu1 }
 0x1bb   : > { %v4111_v30 = vpop.f32.mrb[13].mxu1 }
 0x1bc   : > { %v4113_v32 = vpop.f32.mrb[14].mxu1 }
 0x1bd   : > { %v4115_v33 = vpop.f32.mrb[15].mxu1 }
 0x202   : > { %v1352_v39 = vpop.f32.mrb[0].mxu0 }
 0x203   : > { %v3013_v40 = vadd.f32 %v1352_v39, %v4120_v37  ;;  %v1354_v41 = vpop.f32.mrb[1].mxu0 }
 0x204   : > { %v3014_v42 = vadd.f32 %v1354_v41, %v4122_v38  ;;  %v1356_v43 = vpop.f32.mrb[2].mxu0 }
 0x205   : > { %v3015_v44 = vadd.f32 %v1356_v43, %v4120_v37  ;;  %v1358_v45 = vpop.f32.mrb[3].mxu0  ;;  %v1511_v48 = vmax.f32 %v3013_v40, 0.0 }
 0x206   : > { %v3016_v47 = vadd.f32 %v1358_v45, %v4122_v38  ;;  %v1512_v50 = vmax.f32 %v3014_v42, 0.0 }
 0x207   : > { %v1513_v49 = vmax.f32 %v3015_v44, 0.0 }
 0x208   : > { %v1514_v51 = vmax.f32 %v3016_v47, 0.0 }
 0x209   : > { %v1575_v52 = vpack.c.bf16 %v1513_v49, %v1511_v48 }
 0x20a   : > { %v1576_v53 = vpack.c.bf16 %v1514_v51, %v1512_v50  ;;  %v1362_v54 = vpop.f32.mrb[4].mxu0 }
 0x20b   : > { %v3017_v55 = vadd.f32 %v1362_v54, %v4120_v37  ;;  %v1364_v56 = vpop.f32.mrb[5].mxu0 }
 0x20c   : > { %v3018_v58 = vadd.f32 %v1364_v56, %v4122_v38  ;;  %v1366_v59 = vpop.f32.mrb[6].mxu0  ;;  %1774 = vmatprep.mubr.bf16.mxu1 %v1576_v53 }
 0x20d   : > { %v3019_v60 = vadd.f32 %v1366_v59, %v4120_v37  ;;  %v1368_v61 = vpop.f32.mrb[7].mxu0  ;;  %1775 = vmatmul.mubr.bf16.vlgmr.msra.gmra.mrb[16].mxu1 %v1575_v52  ;;  %v1515_v63 = vmax.f32 %v3017_v55, 0.0 }
 0x20e   : > { %v3020_v62 = vadd.f32 %v1368_v61, %v4122_v38  ;;  %2934 = vmatpush3.bf16.msra.mxu1 %v3434_v46  ;;  %v1516_v2 = vmax.f32 %v3018_v58, 0.0 }
 0x20f   : > { %v1517_v0 = vmax.f32 %v3019_v60, 0.0  ;;  %2935 = vmatprep.subr.bf16.mxu1 %v3435_v57 }
 0x210   : > { %v1518_v3 = vmax.f32 %v3020_v62, 0.0 }
 0x211   : > { %v1577_v4 = vpack.c.bf16 %v1517_v0, %v1515_v63 }
 0x212   : > { %v1578_v5 = vpack.c.bf16 %v1518_v3, %v1516_v2  ;;  %v1372_v6 = vpop.f32.mrb[8].mxu0  ;;  %2936 = vmatpush3.bf16.msra.mxu1 %v3435_v57 }
 0x213   : > { %v3021_v7 = vadd.f32 %v1372_v6, %v4120_v37  ;;  %v1374_v8 = vpop.f32.mrb[9].mxu0  ;;  %2937 = vmatprep.subr.bf16.mxu1 %v3436_v1 }
 0x214   : > { %v3022_v10 = vadd.f32 %v1374_v8, %v4122_v38  ;;  %v1376_v11 = vpop.f32.mrb[10].mxu0  ;;  %1782 = vmatprep.mubr.bf16.mxu1 %v1578_v5 }
 0x215   : > { %v3023_v12 = vadd.f32 %v1376_v11, %v4120_v37  ;;  %v1378_v13 = vpop.f32.mrb[11].mxu0  ;;  %1783 = vmatmul.mubr.bf16.gmra.mrb[20].mxu1 %v1577_v4  ;;  %v1519_v15 = vmax.f32 %v3021_v7, 0.0 }
 0x216   : > { %v3024_v14 = vadd.f32 %v1378_v13, %v4122_v38  ;;  %2938 = vmatpush3.bf16.msra.mxu1 %v3436_v1  ;;  %v1520_v31 = vmax.f32 %v3022_v10, 0.0 }
 0x217   : > { %v1521_v28 = vmax.f32 %v3023_v12, 0.0  ;;  %2939 = vmatprep.subr.bf16.mxu1 %v3437_v9 }
 0x218   : > { %v1522_v34 = vmax.f32 %v3024_v14, 0.0 }
 0x219   : > { %v1579_v35 = vpack.c.bf16 %v1521_v28, %v1519_v15 }
 0x21a   : > { %v1580_v36 = vpack.c.bf16 %v1522_v34, %v1520_v31  ;;  %v1382_v39 = vpop.f32.mrb[12].mxu0  ;;  %2940 = vmatpush3.bf16.msra.mxu1 %v3437_v9 }
 0x21b   : > { %v3025_v40 = vadd.f32 %v1382_v39, %v4120_v37  ;;  %v1384_v41 = vpop.f32.mrb[13].mxu0 }
 0x21c   : > { %v3026_v42 = vadd.f32 %v1384_v41, %v4122_v38  ;;  %v1386_v43 = vpop.f32.mrb[14].mxu0  ;;  %1790 = vmatprep.mubr.bf16.mxu1 %v1580_v36 }
 0x21d   : > { %v3027_v44 = vadd.f32 %v1386_v43, %v4120_v37  ;;  %v1388_v45 = vpop.f32.mrb[15].mxu0  ;;  %1791 = vmatmul.mubr.bf16.gmra.mrb[24].mxu1 %v1579_v35  ;;  %v1523_v47 = vmax.f32 %v3025_v40, 0.0 }
 0x21e   : > { %v3028_v46 = vadd.f32 %v1388_v45, %v4122_v38  ;;  %v1524_v49 = vmax.f32 %v3026_v42, 0.0 }
 0x21f   : > { %v1525_v48 = vmax.f32 %v3027_v44, 0.0 }
 0x220   : > { %v1526_v50 = vmax.f32 %v3028_v46, 0.0 }
 0x221   : > { %v1581_v51 = vpack.c.bf16 %v1525_v48, %v1523_v47 }
 0x222   : > { %v1582_v52 = vpack.c.bf16 %v1526_v50, %v1524_v49  ;;  %v1392_v53 = vpop.f32.mrb[16].mxu0 }
 0x223   : > { %v3029_v54 = vadd.f32 %v1392_v53, %v4120_v37  ;;  %v1394_v55 = vpop.f32.mrb[17].mxu0 }
 0x224   : > { %v3030_v56 = vadd.f32 %v1394_v55, %v4122_v38  ;;  %v1396_v57 = vpop.f32.mrb[18].mxu0  ;;  %1798 = vmatprep.mubr.bf16.mxu1 %v1582_v52 }
 0x225   : > { %v3031_v58 = vadd.f32 %v1396_v57, %v4120_v37  ;;  %v1398_v59 = vpop.f32.mrb[19].mxu0  ;;  %1799 = vmatmul.mubr.bf16.gmra.mrb[28].mxu1 %v1581_v51  ;;  %v1527_v61 = vmax.f32 %v3029_v54, 0.0 }
 0x226   : > { %v3032_v60 = vadd.f32 %v1398_v59, %v4122_v38  ;;  %v1528_v63 = vmax.f32 %v3030_v56, 0.0 }
 0x227   : > { %v1529_v62 = vmax.f32 %v3031_v58, 0.0 }
 0x228   : > { %v1530_v0 = vmax.f32 %v3032_v60, 0.0 }
 0x229   : > { %v1583_v1 = vpack.c.bf16 %v1529_v62, %v1527_v61 }
 0x22a   : > { %v1584_v2 = vpack.c.bf16 %v1530_v0, %v1528_v63  ;;  %v1402_v3 = vpop.f32.mrb[20].mxu0 }
 0x22b   : > { %v3033_v4 = vadd.f32 %v1402_v3, %v4120_v37  ;;  %v1404_v5 = vpop.f32.mrb[21].mxu0 }
 0x22c   : > { %v3034_v6 = vadd.f32 %v1404_v5, %v4122_v38  ;;  %v1406_v7 = vpop.f32.mrb[22].mxu0  ;;  %1806 = vmatprep.mubr.bf16.mxu1 %v1584_v2 }
 0x22d   : > { %v3035_v8 = vadd.f32 %v1406_v7, %v4120_v37  ;;  %v1408_v9 = vpop.f32.mrb[23].mxu0  ;;  %1807 = vmatmul.mubr.bf16.gmra.mrb[32].mxu1 %v1583_v1  ;;  %v1531_v11 = vmax.f32 %v3033_v4, 0.0 }
 0x22e   : > { %v3036_v10 = vadd.f32 %v1408_v9, %v4122_v38  ;;  %v1532_v13 = vmax.f32 %v3034_v6, 0.0 }
 0x22f   : > { %v1533_v12 = vmax.f32 %v3035_v8, 0.0 }
 0x230   : > { %v1534_v14 = vmax.f32 %v3036_v10, 0.0 }
 0x231   : > { %v1585_v15 = vpack.c.bf16 %v1533_v12, %v1531_v11 }
 0x232   : > { %v1586_v28 = vpack.c.bf16 %v1534_v14, %v1532_v13  ;;  %v1412_v31 = vpop.f32.mrb[24].mxu0 }
 0x233   : > { %v3037_v34 = vadd.f32 %v1412_v31, %v4120_v37  ;;  %v1414_v35 = vpop.f32.mrb[25].mxu0 }
 0x234   : > { %v3038_v36 = vadd.f32 %v1414_v35, %v4122_v38  ;;  %v1416_v39 = vpop.f32.mrb[26].mxu0  ;;  %1814 = vmatprep.mubr.bf16.mxu1 %v1586_v28 }
 0x235   : > { %v3039_v40 = vadd.f32 %v1416_v39, %v4120_v37  ;;  %v1418_v41 = vpop.f32.mrb[27].mxu0  ;;  %1815 = vmatmul.mubr.bf16.gmra.mrb[36].mxu1 %v1585_v15  ;;  %v1535_v43 = vmax.f32 %v3037_v34, 0.0 }
 0x236   : > { %v3040_v42 = vadd.f32 %v1418_v41, %v4122_v38  ;;  %v1536_v45 = vmax.f32 %v3038_v36, 0.0 }
 0x237   : > { %v1537_v44 = vmax.f32 %v3039_v40, 0.0 }
 0x238   : > { %v1538_v46 = vmax.f32 %v3040_v42, 0.0 }
 0x239   : > { %v1587_v47 = vpack.c.bf16 %v1537_v44, %v1535_v43 }
 0x23a   : > { %v1588_v48 = vpack.c.bf16 %v1538_v46, %v1536_v45  ;;  %v1422_v49 = vpop.f32.mrb[28].mxu0 }
 0x23b   : > { %v3041_v50 = vadd.f32 %v1422_v49, %v4120_v37  ;;  %v1424_v51 = vpop.f32.mrb[29].mxu0 }
 0x23c   : > { %v3042_v52 = vadd.f32 %v1424_v51, %v4122_v38  ;;  %v1426_v53 = vpop.f32.mrb[30].mxu0  ;;  %1822 = vmatprep.mubr.bf16.mxu1 %v1588_v48 }
 0x23d   : > { %v3043_v54 = vadd.f32 %v1426_v53, %v4120_v37  ;;  %v1428_v55 = vpop.f32.mrb[31].mxu0  ;;  %1823 = vmatmul.mubr.bf16.gmra.mrb[40].mxu1 %v1587_v47  ;;  %v1539_v57 = vmax.f32 %v3041_v50, 0.0 }
 0x23e   : > { %v3044_v56 = vadd.f32 %v1428_v55, %v4122_v38  ;;  %v1540_v59 = vmax.f32 %v3042_v52, 0.0 }
 0x23f   : > { %v1541_v58 = vmax.f32 %v3043_v54, 0.0 }
 0x240   : > { %v1542_v60 = vmax.f32 %v3044_v56, 0.0 }
 0x241   : > { %v1589_v61 = vpack.c.bf16 %v1541_v58, %v1539_v57 }
 0x242   : > { %v1590_v62 = vpack.c.bf16 %v1542_v60, %v1540_v59  ;;  %v1432_v63 = vpop.f32.mrb[32].mxu0 }
 0x243   : > { %v3045_v0 = vadd.f32 %v1432_v63, %v4120_v37  ;;  %v1434_v1 = vpop.f32.mrb[33].mxu0 }
 0x244   : > { %v3046_v2 = vadd.f32 %v1434_v1, %v4122_v38  ;;  %v1436_v3 = vpop.f32.mrb[34].mxu0  ;;  %1830 = vmatprep.mubr.bf16.mxu1 %v1590_v62 }
 0x245   : > { %v3047_v4 = vadd.f32 %v1436_v3, %v4120_v37  ;;  %v1438_v5 = vpop.f32.mrb[35].mxu0  ;;  %1831 = vmatmul.mubr.bf16.gmra.mrb[44].mxu1 %v1589_v61  ;;  %v1543_v7 = vmax.f32 %v3045_v0, 0.0 }
 0x246   : > { %v3048_v6 = vadd.f32 %v1438_v5, %v4122_v38  ;;  %v1544_v9 = vmax.f32 %v3046_v2, 0.0  ;;  %v1280_v5 = vadd.f32 %v4085_v16, %v4120_v37 }
 0x247   : > { %v1545_v8 = vmax.f32 %v3047_v4, 0.0 }
 0x248   : > { %v1546_v10 = vmax.f32 %v3048_v6, 0.0 }
 0x249   : > { %v1591_v11 = vpack.c.bf16 %v1545_v8, %v1543_v7  ;;  %v1282_v8 = vadd.f32 %v4087_v17, %v4122_v38 }
 0x24a   : > { %v1592_v12 = vpack.c.bf16 %v1546_v10, %v1544_v9  ;;  %v1442_v13 = vpop.f32.mrb[36].mxu0 }
 0x24b   : > { %v3049_v14 = vadd.f32 %v1442_v13, %v4120_v37  ;;  %v1444_v15 = vpop.f32.mrb[37].mxu0  ;;  %v1284_v13 = vadd.f32 %v4089_v18, %v4120_v37  ;;  %v1290_v18 = vadd.f32 %v4093_v20, %v4120_v37 }
 0x24c   : > { %v3050_v28 = vadd.f32 %v1444_v15, %v4122_v38  ;;  %v1446_v31 = vpop.f32.mrb[38].mxu0  ;;  %1838 = vmatprep.mubr.bf16.mxu1 %v1592_v12  ;;  %v3438_v12 = vld [vmem:[#allocation8 + $0x20] sm:$0xff]  }
 0x24d   : > { %v3051_v34 = vadd.f32 %v1446_v31, %v4120_v37  ;;  %v1448_v35 = vpop.f32.mrb[39].mxu0  ;;  %1839 = vmatmul.mubr.bf16.gmra.mrb[48].mxu1 %v1591_v11  ;;  %v1547_v39 = vmax.f32 %v3049_v14, 0.0  ;;  %2941 = vmatprep.subr.bf16.mxu1 %v3438_v12 }
 0x24e   : > { %v3052_v36 = vadd.f32 %v1448_v35, %v4122_v38  ;;  %v1548_v41 = vmax.f32 %v3050_v28, 0.0  ;;  %v1286_v28 = vadd.f32 %v4091_v19, %v4122_v38  ;;  %2942 = vmatpush3.bf16.msra.mxu1 %v3438_v12  ;;  %v1292_v19 = vadd.f32 %v4095_v21, %v4122_v38 }
 0x24f   : > { %v1549_v40 = vmax.f32 %v3051_v34, 0.0  ;;  %v1314_v12 = vadd.f32 %v4113_v32, %v4120_v37 }
 0x250   : > { %v1550_v42 = vmax.f32 %v3052_v36, 0.0  ;;  %v3439_v36 = vld [vmem:[#allocation8 + $0x28] sm:$0xff]  }
 0x251   : > { %v1593_v43 = vpack.c.bf16 %v1549_v40, %v1547_v39  ;;  %2943 = vmatprep.subr.bf16.mxu1 %v3439_v36 }
 0x252   : > { %v1594_v44 = vpack.c.bf16 %v1550_v42, %v1548_v41  ;;  %v1452_v45 = vpop.f32.mrb[40].mxu0  ;;  %2944 = vmatpush3.bf16.msra.mxu1 %v3439_v36 }
 0x253   : > { %v3053_v46 = vadd.f32 %v1452_v45, %v4120_v37  ;;  %v1454_v47 = vpop.f32.mrb[41].mxu0 }
 0x254   : > { %v3054_v48 = vadd.f32 %v1454_v47, %v4122_v38  ;;  %v1456_v49 = vpop.f32.mrb[42].mxu0  ;;  %1846 = vmatprep.mubr.bf16.mxu1 %v1594_v44  ;;  %v1294_v47 = vadd.f32 %v4097_v22, %v4120_v37  ;;  %v1300_v22 = vadd.f32 %v4101_v24, %v4120_v37 }
 0x255   : > { %v3055_v50 = vadd.f32 %v1456_v49, %v4120_v37  ;;  %v1458_v51 = vpop.f32.mrb[43].mxu0  ;;  %1847 = vmatmul.mubr.bf16.gmra.mrb[52].mxu1 %v1593_v43  ;;  %v1551_v53 = vmax.f32 %v3053_v46, 0.0  ;;  %v3440_v46 = vld [vmem:[#allocation8 + $0x30] sm:$0xff]  }
 0x256   : > { %v3056_v52 = vadd.f32 %v1458_v51, %v4122_v38  ;;  %v1552_v55 = vmax.f32 %v3054_v48, 0.0  ;;  %2945 = vmatprep.subr.bf16.mxu1 %v3440_v46 }
 0x257   : > { %v1553_v54 = vmax.f32 %v3055_v50, 0.0  ;;  %v1296_v50 = vadd.f32 %v4099_v23, %v4122_v38  ;;  %2946 = vmatpush3.bf16.msra.mxu1 %v3440_v46  ;;  %v1302_v23 = vadd.f32 %v4103_v25, %v4122_v38 }
 0x258   : > { %v1554_v56 = vmax.f32 %v3056_v52, 0.0 }
 0x259   : > { %v1595_v57 = vpack.c.bf16 %v1553_v54, %v1551_v53  ;;  %v3441_v54 = vld [vmem:[#allocation8 + $0x38] sm:$0xff]  }
 0x25a   : > { %v1596_v58 = vpack.c.bf16 %v1554_v56, %v1552_v55  ;;  %v1462_v59 = vpop.f32.mrb[44].mxu0  ;;  %2947 = vmatprep.subr.bf16.mxu1 %v3441_v54 }
 0x25b   : > { %v3057_v60 = vadd.f32 %v1462_v59, %v4120_v37  ;;  %v1464_v61 = vpop.f32.mrb[45].mxu0  ;;  %2948 = vmatpush3.bf16.msra.mxu1 %v3441_v54 }
 0x25c   : > { %v3058_v62 = vadd.f32 %v1464_v61, %v4122_v38  ;;  %v1466_v63 = vpop.f32.mrb[46].mxu0  ;;  %1854 = vmatprep.mubr.bf16.mxu1 %v1596_v58 }
 0x25d   : > { %v3059_v0 = vadd.f32 %v1466_v63, %v4120_v37  ;;  %v1468_v1 = vpop.f32.mrb[47].mxu0  ;;  %1855 = vmatmul.mubr.bf16.gmra.mrb[56].mxu1 %v1595_v57  ;;  %v1555_v3 = vmax.f32 %v3057_v60, 0.0 }
 0x25e   : > { %v3060_v2 = vadd.f32 %v1468_v1, %v4122_v38  ;;  %v1556_v6 = vmax.f32 %v3058_v62, 0.0  ;;  %v1304_v62 = vadd.f32 %v4105_v26, %v4120_v37  ;;  %v1306_v1 = vadd.f32 %v4107_v27, %v4122_v38 }
 0x25f   : > { %v1557_v4 = vmax.f32 %v3059_v0, 0.0  ;;  %v1312_v26 = vadd.f32 %v4111_v30, %v4122_v38 }
 0x260   : > { %v1558_v7 = vmax.f32 %v3060_v2, 0.0 }
 0x261   : > { %v1597_v9 = vpack.c.bf16 %v1557_v4, %v1555_v3 }
 0x262   : > { %v1598_v10 = vpack.c.bf16 %v1558_v7, %v1556_v6  ;;  %v1472_v11 = vpop.f32.mrb[48].mxu0  ;;  %v1310_v7 = vadd.f32 %v4109_v29, %v4120_v37 }
 0x263   : > { %v1473_v14 = vadd.f32 %v1472_v11, %v1280_v5  ;;  %v1474_v15 = vpop.f32.mrb[49].mxu0 }
 0x264   : > { %v1475_v31 = vadd.f32 %v1474_v15, %v1282_v8  ;;  %v1476_v34 = vpop.f32.mrb[50].mxu0  ;;  %1862 = vmatprep.mubr.bf16.mxu1 %v1598_v10  ;;  %v1316_v15 = vadd.f32 %v4115_v33, %v4122_v38  ;;  %v4207_v33 = vld [vmem:[%s4624_s4] ss:$0 sm:$0xff] }
 0x265   : > { %v1477_v16 = vadd.f32 %v1476_v34, %v1284_v13  ;;  %v1478_v35 = vpop.f32.mrb[51].mxu0  ;;  %1863 = vmatmul.mubr.bf16.gmra.mrb[60].mxu1 %v1597_v9  ;;  %v1559_v39 = vmax.f32 %v1473_v14, 0.0 }
 0x266   : > { %v1479_v17 = vadd.f32 %v1478_v35, %v1286_v28  ;;  %v1560_v41 = vmax.f32 %v1475_v31, 0.0 }
 0x267   : > { %v1561_v40 = vmax.f32 %v1477_v16, 0.0 }
 0x268   : > { %v1562_v42 = vmax.f32 %v1479_v17, 0.0 }
 0x269   : > { %v1599_v43 = vpack.c.bf16 %v1561_v40, %v1559_v39 }
 0x26a   : > { %v1600_v44 = vpack.c.bf16 %v1562_v42, %v1560_v41  ;;  %v1482_v45 = vpop.f32.mrb[52].mxu0 }
 0x26b   : > { %v1483_v48 = vadd.f32 %v1482_v45, %v1290_v18  ;;  %v1484_v49 = vpop.f32.mrb[53].mxu0 }
 0x26c   : > { %v1485_v20 = vadd.f32 %v1484_v49, %v1292_v19  ;;  %v1486_v51 = vpop.f32.mrb[54].mxu0  ;;  %1870 = vmatprep.mubr.bf16.mxu1 %v1600_v44 }
 0x26d   : > { %v1487_v52 = vadd.f32 %v1486_v51, %v1294_v47  ;;  %v1488_v21 = vpop.f32.mrb[55].mxu0  ;;  %1871 = vmatmul.mubr.bf16.gmra.mrb[64].mxu1 %v1599_v43  ;;  %v1563_v55 = vmax.f32 %v1483_v48, 0.0 }
 0x26e   : > { %v1489_v53 = vadd.f32 %v1488_v21, %v1296_v50  ;;  %v1564_v57 = vmax.f32 %v1485_v20, 0.0 }
 0x26f   : > { %v1565_v56 = vmax.f32 %v1487_v52, 0.0 }
 0x270   : > { %v1566_v58 = vmax.f32 %v1489_v53, 0.0 }
 0x271   : > { %v1601_v59 = vpack.c.bf16 %v1565_v56, %v1563_v55 }
 0x272   : > { %v1602_v60 = vpack.c.bf16 %v1566_v58, %v1564_v57  ;;  %v1492_v61 = vpop.f32.mrb[56].mxu0 }
 0x273   : > { %v1493_v63 = vadd.f32 %v1492_v61, %v1300_v22  ;;  %v1494_v0 = vpop.f32.mrb[57].mxu0 }
 0x274   : > { %v1495_v2 = vadd.f32 %v1494_v0, %v1302_v23  ;;  %v1496_v24 = vpop.f32.mrb[58].mxu0  ;;  %1878 = vmatprep.mubr.bf16.mxu1 %v1602_v60 }
 0x275   : > { %v1497_v3 = vadd.f32 %v1496_v24, %v1304_v62  ;;  %v1498_v4 = vpop.f32.mrb[59].mxu0  ;;  %1879 = vmatmul.mubr.bf16.gmra.mrb[68].mxu1 %v1601_v59  ;;  %v1567_v5 = vmax.f32 %v1493_v63, 0.0 }
 0x276   : > { %v1499_v25 = vadd.f32 %v1498_v4, %v1306_v1  ;;  %v1568_v8 = vmax.f32 %v1495_v2, 0.0 }
 0x277   : > { %v1569_v6 = vmax.f32 %v1497_v3, 0.0 }
 0x278   : > { %v1570_v9 = vmax.f32 %v1499_v25, 0.0 }
 0x279   : > { %v1603_v10 = vpack.c.bf16 %v1569_v6, %v1567_v5 }
 0x27a   : > { %v1604_v11 = vpack.c.bf16 %v1570_v9, %v1568_v8  ;;  %v1502_v27 = vpop.f32.mrb[60].mxu0 }
 0x27b   : > { %v1503_v13 = vadd.f32 %v1502_v27, %v1310_v7  ;;  %v1504_v14 = vpop.f32.mrb[61].mxu0 }
 0x27c   : > { %v1505_v28 = vadd.f32 %v1504_v14, %v1312_v26  ;;  %v1506_v31 = vpop.f32.mrb[62].mxu0  ;;  %1886 = vmatprep.mubr.bf16.mxu1 %v1604_v11 }
 0x27d   : > { %v1507_v29 = vadd.f32 %v1506_v31, %v1314_v12  ;;  %v1508_v34 = vpop.f32.mrb[63].mxu0  ;;  %1887 = vmatmul.mubr.bf16.gmra.mrb[72].mxu1 %v1603_v10  ;;  %v1571_v35 = vmax.f32 %v1503_v13, 0.0 }
 0x27e   : > { %v1509_v16 = vadd.f32 %v1508_v34, %v1316_v15  ;;  %v1572_v17 = vmax.f32 %v1505_v28, 0.0 }
 0x27f   : > { %v1573_v30 = vmax.f32 %v1507_v29, 0.0 }
 0x280   : > { %v1574_v36 = vmax.f32 %v1509_v16, 0.0 }
 0x281   : > { %v1605_v39 = vpack.c.bf16 %v1573_v30, %v1571_v35 }
 0x282   : > { %v1606_v40 = vpack.c.bf16 %v1574_v36, %v1572_v17 }
 0x284   : > { %1894 = vmatprep.mubr.bf16.mxu1 %v1606_v40 }
 0x285   : > { %1895 = vmatmul.mubr.bf16.gmra.mrb[76].mxu1 %v1605_v39 }
 0x2e0   : > { %v2813_v32 = vpop.f32.mrb[16].mxu1 }
 0x2e1   : > { %v2814_v37 = vpop.f32.mrb[17].mxu1 }
 0x2e2   : > { %v2815_v38 = vadd.f32 %v2814_v37, %v2813_v32  ;;  %v2816_v18 = vpop.f32.mrb[18].mxu1 }
 0x2e3   : > { %v2817_v41 = vpop.f32.mrb[19].mxu1 }
 0x2e4   : > { %v1777_v42 = vadd.f32 %v2815_v38, %v4207_v33  ;;  %v2818_v19 = vadd.f32 %v2817_v41, %v2816_v18 }
 0x2e6   : > { %v1780_v43 = vadd.f32 %v2818_v19, %v4207_v33  ;;  %v1903_v44 = vmax.f32 %v1777_v42, 0.0 }
 0x2e8   : > { %v1904_v45 = vmax.f32 %v1780_v43, 0.0  ;;  %v2819_v46 = vpop.f32.mrb[20].mxu1 }
 0x2e9   : > { %v2820_v47 = vpop.f32.mrb[21].mxu1 }
 0x2ea   : > { %v2821_v48 = vadd.f32 %v2820_v47, %v2819_v46  ;;  %v2822_v49 = vpop.f32.mrb[22].mxu1  ;;  %v1935_v50 = vpack.c.bf16 %v1904_v45, %v1903_v44 }
 0x2eb   : > { %v2823_v20 = vpop.f32.mrb[23].mxu1 }
 0x2ec   : > { %v1785_v51 = vadd.f32 %v2821_v48, %v4207_v33  ;;  %v2824_v52 = vadd.f32 %v2823_v20, %v2822_v49  ;;  %2949 = vmatprep.mubr.bf16.mxu1 %v1935_v50 }
 0x2ee   : > { %v1788_v21 = vadd.f32 %v2824_v52, %v4207_v33  ;;  %v1905_v53 = vmax.f32 %v1785_v51, 0.0 }
 0x2f0   : > { %v1906_v54 = vmax.f32 %v1788_v21, 0.0  ;;  %v2825_v55 = vpop.f32.mrb[24].mxu1 }
 0x2f1   : > { %v2826_v56 = vpop.f32.mrb[25].mxu1 }
 0x2f2   : > { %v1936_v22 = vpack.c.bf16 %v1906_v54, %v1905_v53  ;;  %v2827_v57 = vadd.f32 %v2826_v56, %v2825_v55  ;;  %v2828_v58 = vpop.f32.mrb[26].mxu1 }
 0x2f3   : > { %v2829_v23 = vpop.f32.mrb[27].mxu1 }
 0x2f4   : > { %v1793_v59 = vadd.f32 %v2827_v57, %v4207_v33  ;;  %v2830_v60 = vadd.f32 %v2829_v23, %v2828_v58  ;;  %2950 = vmatmul.mubr.bf16.vlgmr.msra.gmra.mrb[80].mxu1 %v1936_v22 }
 0x2f6   : > { %v1796_v61 = vadd.f32 %v2830_v60, %v4207_v33  ;;  %v1907_v62 = vmax.f32 %v1793_v59, 0.0 }
 0x2f8   : > { %v1908_v63 = vmax.f32 %v1796_v61, 0.0  ;;  %v2831_v0 = vpop.f32.mrb[28].mxu1 }
 0x2f9   : > { %v2832_v1 = vpop.f32.mrb[29].mxu1 }
 0x2fa   : > { %v2833_v2 = vadd.f32 %v2832_v1, %v2831_v0  ;;  %v2834_v24 = vpop.f32.mrb[30].mxu1  ;;  %v1937_v3 = vpack.c.bf16 %v1908_v63, %v1907_v62 }
 0x2fb   : > { %v2835_v4 = vpop.f32.mrb[31].mxu1 }
 0x2fc   : > { %v1801_v25 = vadd.f32 %v2833_v2, %v4207_v33  ;;  %v2836_v5 = vadd.f32 %v2835_v4, %v2834_v24  ;;  %2953 = vmatprep.mubr.bf16.mxu1 %v1937_v3 }
 0x2fe   : > { %v1804_v6 = vadd.f32 %v2836_v5, %v4207_v33  ;;  %v1909_v7 = vmax.f32 %v1801_v25, 0.0 }
 0x300   : > { %v1910_v8 = vmax.f32 %v1804_v6, 0.0  ;;  %v2837_v9 = vpop.f32.mrb[32].mxu1 }
 0x301   : > { %v2838_v26 = vpop.f32.mrb[33].mxu1 }
 0x302   : > { %v2839_v10 = vadd.f32 %v2838_v26, %v2837_v9  ;;  %v2840_v11 = vpop.f32.mrb[34].mxu1  ;;  %v1938_v27 = vpack.c.bf16 %v1910_v8, %v1909_v7 }
 0x303   : > { %v2841_v12 = vpop.f32.mrb[35].mxu1 }
 0x304   : > { %v1809_v13 = vadd.f32 %v2839_v10, %v4207_v33  ;;  %v2842_v14 = vadd.f32 %v2841_v12, %v2840_v11  ;;  %2954 = vmatmul.mubr.bf16.gmra.mrb[84].mxu1 %v1938_v27 }
 0x306   : > { %v1812_v15 = vadd.f32 %v2842_v14, %v4207_v33  ;;  %v1911_v28 = vmax.f32 %v1809_v13, 0.0 }
 0x308   : > { %v1912_v31 = vmax.f32 %v1812_v15, 0.0  ;;  %v2843_v29 = vpop.f32.mrb[36].mxu1 }
 0x309   : > { %v2844_v34 = vpop.f32.mrb[37].mxu1 }
 0x30a   : > { %v2845_v16 = vadd.f32 %v2844_v34, %v2843_v29  ;;  %v2846_v35 = vpop.f32.mrb[38].mxu1  ;;  %v1939_v30 = vpack.c.bf16 %v1912_v31, %v1911_v28 }
 0x30b   : > { %v2847_v17 = vpop.f32.mrb[39].mxu1 }
 0x30c   : > { %v1817_v36 = vadd.f32 %v2845_v16, %v4207_v33  ;;  %v2848_v39 = vadd.f32 %v2847_v17, %v2846_v35  ;;  %2957 = vmatprep.mubr.bf16.mxu1 %v1939_v30 }
 0x30e   : > { %v1820_v40 = vadd.f32 %v2848_v39, %v4207_v33  ;;  %v1913_v32 = vmax.f32 %v1817_v36, 0.0 }
 0x310   : > { %v1914_v37 = vmax.f32 %v1820_v40, 0.0  ;;  %v2849_v38 = vpop.f32.mrb[40].mxu1 }
 0x311   : > { %v2850_v18 = vpop.f32.mrb[41].mxu1 }
 0x312   : > { %v2851_v41 = vadd.f32 %v2850_v18, %v2849_v38  ;;  %v2852_v42 = vpop.f32.mrb[42].mxu1  ;;  %v1940_v19 = vpack.c.bf16 %v1914_v37, %v1913_v32 }
 0x313   : > { %v2853_v43 = vpop.f32.mrb[43].mxu1 }
 0x314   : > { %v1825_v44 = vadd.f32 %v2851_v41, %v4207_v33  ;;  %v2854_v45 = vadd.f32 %v2853_v43, %v2852_v42  ;;  %2958 = vmatmul.mubr.bf16.gmra.mrb[88].mxu1 %v1940_v19 }
 0x316   : > { %v1828_v46 = vadd.f32 %v2854_v45, %v4207_v33  ;;  %v1915_v47 = vmax.f32 %v1825_v44, 0.0 }
 0x318   : > { %v1916_v48 = vmax.f32 %v1828_v46, 0.0  ;;  %v2855_v49 = vpop.f32.mrb[44].mxu1 }
 0x319   : > { %v2856_v50 = vpop.f32.mrb[45].mxu1 }
 0x31a   : > { %v2857_v20 = vadd.f32 %v2856_v50, %v2855_v49  ;;  %v2858_v51 = vpop.f32.mrb[46].mxu1  ;;  %v1941_v52 = vpack.c.bf16 %v1916_v48, %v1915_v47 }
 0x31b   : > { %v2859_v21 = vpop.f32.mrb[47].mxu1 }
 0x31c   : > { %v1833_v53 = vadd.f32 %v2857_v20, %v4207_v33  ;;  %v2860_v54 = vadd.f32 %v2859_v21, %v2858_v51  ;;  %2961 = vmatprep.mubr.bf16.mxu1 %v1941_v52 }
 0x31e   : > { %v1836_v55 = vadd.f32 %v2860_v54, %v4207_v33  ;;  %v1917_v56 = vmax.f32 %v1833_v53, 0.0 }
 0x320   : > { %v1918_v22 = vmax.f32 %v1836_v55, 0.0  ;;  %v2861_v57 = vpop.f32.mrb[48].mxu1 }
 0x321   : > { %v2862_v58 = vpop.f32.mrb[49].mxu1 }
 0x322   : > { %v2863_v23 = vadd.f32 %v2862_v58, %v2861_v57  ;;  %v2864_v59 = vpop.f32.mrb[50].mxu1  ;;  %v1942_v60 = vpack.c.bf16 %v1918_v22, %v1917_v56 }
 0x323   : > { %v2865_v61 = vpop.f32.mrb[51].mxu1 }
 0x324   : > { %v1841_v62 = vadd.f32 %v2863_v23, %v4207_v33  ;;  %v2866_v63 = vadd.f32 %v2865_v61, %v2864_v59  ;;  %2962 = vmatmul.mubr.bf16.gmra.mrb[92].mxu1 %v1942_v60 }
 0x326   : > { %v1844_v0 = vadd.f32 %v2866_v63, %v4207_v33  ;;  %v1919_v1 = vmax.f32 %v1841_v62, 0.0 }
 0x328   : > { %v1920_v2 = vmax.f32 %v1844_v0, 0.0  ;;  %v2867_v24 = vpop.f32.mrb[52].mxu1 }
 0x329   : > { %v2868_v3 = vpop.f32.mrb[53].mxu1 }
 0x32a   : > { %v2869_v4 = vadd.f32 %v2868_v3, %v2867_v24  ;;  %v2870_v25 = vpop.f32.mrb[54].mxu1  ;;  %v1943_v5 = vpack.c.bf16 %v1920_v2, %v1919_v1 }
 0x32b   : > { %v2871_v6 = vpop.f32.mrb[55].mxu1 }
 0x32c   : > { %v1849_v7 = vadd.f32 %v2869_v4, %v4207_v33  ;;  %v2872_v8 = vadd.f32 %v2871_v6, %v2870_v25  ;;  %2965 = vmatprep.mubr.bf16.mxu1 %v1943_v5 }
 0x32e   : > { %v1852_v9 = vadd.f32 %v2872_v8, %v4207_v33  ;;  %v1921_v26 = vmax.f32 %v1849_v7, 0.0 }
 0x330   : > { %v1922_v10 = vmax.f32 %v1852_v9, 0.0  ;;  %v2873_v11 = vpop.f32.mrb[56].mxu1 }
 0x331   : > { %v2874_v27 = vpop.f32.mrb[57].mxu1 }
 0x332   : > { %v2875_v12 = vadd.f32 %v2874_v27, %v2873_v11  ;;  %v2876_v13 = vpop.f32.mrb[58].mxu1  ;;  %v1944_v14 = vpack.c.bf16 %v1922_v10, %v1921_v26 }
 0x333   : > { %v2877_v15 = vpop.f32.mrb[59].mxu1 }
 0x334   : > { %v1857_v28 = vadd.f32 %v2875_v12, %v4207_v33  ;;  %v2878_v31 = vadd.f32 %v2877_v15, %v2876_v13  ;;  %2966 = vmatmul.mubr.bf16.gmra.mrb[96].mxu1 %v1944_v14  ;;  %v4244_v14 = vld [vmem:[%s4626_s6] ss:$0 sm:$0xff] }
 0x336   : > { %v1860_v29 = vadd.f32 %v2878_v31, %v4207_v33  ;;  %v1923_v34 = vmax.f32 %v1857_v28, 0.0 }
 0x338   : > { %v1924_v16 = vmax.f32 %v1860_v29, 0.0  ;;  %v2879_v35 = vpop.f32.mrb[60].mxu1 }
 0x339   : > { %v2880_v30 = vpop.f32.mrb[61].mxu1 }
 0x33a   : > { %v2881_v17 = vadd.f32 %v2880_v30, %v2879_v35  ;;  %v2882_v36 = vpop.f32.mrb[62].mxu1  ;;  %v1945_v39 = vpack.c.bf16 %v1924_v16, %v1923_v34 }
 0x33b   : > { %v2883_v40 = vpop.f32.mrb[63].mxu1 }
 0x33c   : > { %v1865_v32 = vadd.f32 %v2881_v17, %v4207_v33  ;;  %v2884_v37 = vadd.f32 %v2883_v40, %v2882_v36  ;;  %2969 = vmatprep.mubr.bf16.mxu1 %v1945_v39 }
 0x33e   : > { %v1868_v38 = vadd.f32 %v2884_v37, %v4207_v33  ;;  %v1925_v18 = vmax.f32 %v1865_v32, 0.0 }
 0x340   : > { %v1926_v41 = vmax.f32 %v1868_v38, 0.0  ;;  %v2885_v42 = vpop.f32.mrb[64].mxu1 }
 0x341   : > { %v2886_v19 = vpop.f32.mrb[65].mxu1 }
 0x342   : > { %v2887_v43 = vadd.f32 %v2886_v19, %v2885_v42  ;;  %v2888_v44 = vpop.f32.mrb[66].mxu1  ;;  %v1946_v45 = vpack.c.bf16 %v1926_v41, %v1925_v18 }
 0x343   : > { %v2889_v46 = vpop.f32.mrb[67].mxu1 }
 0x344   : > { %v1873_v47 = vadd.f32 %v2887_v43, %v4207_v33  ;;  %v2890_v48 = vadd.f32 %v2889_v46, %v2888_v44  ;;  %2970 = vmatmul.mubr.bf16.gmra.mrb[100].mxu1 %v1946_v45 }
 0x346   : > { %v1876_v49 = vadd.f32 %v2890_v48, %v4207_v33  ;;  %v1927_v50 = vmax.f32 %v1873_v47, 0.0 }
 0x348   : > { %v1928_v20 = vmax.f32 %v1876_v49, 0.0  ;;  %v2891_v51 = vpop.f32.mrb[68].mxu1 }
 0x349   : > { %v2892_v52 = vpop.f32.mrb[69].mxu1 }
 0x34a   : > { %v2893_v21 = vadd.f32 %v2892_v52, %v2891_v51  ;;  %v2894_v53 = vpop.f32.mrb[70].mxu1  ;;  %v1947_v54 = vpack.c.bf16 %v1928_v20, %v1927_v50 }
 0x34b   : > { %v2895_v55 = vpop.f32.mrb[71].mxu1 }
 0x34c   : > { %v1881_v56 = vadd.f32 %v2893_v21, %v4207_v33  ;;  %v2896_v22 = vadd.f32 %v2895_v55, %v2894_v53  ;;  %2973 = vmatprep.mubr.bf16.mxu1 %v1947_v54 }
 0x34e   : > { %v1884_v57 = vadd.f32 %v2896_v22, %v4207_v33  ;;  %v1929_v58 = vmax.f32 %v1881_v56, 0.0 }
 0x350   : > { %v1930_v23 = vmax.f32 %v1884_v57, 0.0  ;;  %v2897_v59 = vpop.f32.mrb[72].mxu1 }
 0x351   : > { %v2898_v60 = vpop.f32.mrb[73].mxu1 }
 0x352   : > { %v2899_v61 = vadd.f32 %v2898_v60, %v2897_v59  ;;  %v2900_v62 = vpop.f32.mrb[74].mxu1  ;;  %v1948_v63 = vpack.c.bf16 %v1930_v23, %v1929_v58 }
 0x353   : > { %v2901_v0 = vpop.f32.mrb[75].mxu1 }
 0x354   : > { %v1889_v1 = vadd.f32 %v2899_v61, %v4207_v33  ;;  %v2902_v2 = vadd.f32 %v2901_v0, %v2900_v62  ;;  %2974 = vmatmul.mubr.bf16.gmra.mrb[104].mxu1 %v1948_v63 }
 0x356   : > { %v1892_v24 = vadd.f32 %v2902_v2, %v4207_v33  ;;  %v1931_v3 = vmax.f32 %v1889_v1, 0.0 }
 0x358   : > { %v1932_v4 = vmax.f32 %v1892_v24, 0.0  ;;  %v2903_v25 = vpop.f32.mrb[76].mxu1 }
 0x359   : > { %v2904_v5 = vpop.f32.mrb[77].mxu1 }
 0x35a   : > { %v2905_v6 = vadd.f32 %v2904_v5, %v2903_v25  ;;  %v2906_v7 = vpop.f32.mrb[78].mxu1  ;;  %v1949_v8 = vpack.c.bf16 %v1932_v4, %v1931_v3 }
 0x35b   : > { %v2907_v9 = vpop.f32.mrb[79].mxu1 }
 0x35c   : > { %v1897_v26 = vadd.f32 %v2905_v6, %v4207_v33  ;;  %v2908_v10 = vadd.f32 %v2907_v9, %v2906_v7  ;;  %2977 = vmatprep.mubr.bf16.mxu1 %v1949_v8 }
 0x35e   : > { %v1900_v11 = vadd.f32 %v2908_v10, %v4207_v33  ;;  %v1933_v27 = vmax.f32 %v1897_v26, 0.0 }
 0x360   : > { %v1934_v12 = vmax.f32 %v1900_v11, 0.0 }
 0x362   : > { %v1950_v13 = vpack.c.bf16 %v1934_v12, %v1933_v27 }
 0x364   : > { %2978 = vmatmul.mubr.bf16.gmra.mrb[108].mxu1 %v1950_v13 }
 0x3c7   : > { %v2951_v15 = vpop.f32.mrb[80].mxu1 }
 0x3c8   : > { %v4247_v28 = vadd.f32 %v2951_v15, %v4244_v14  ;;  %v2056_v31 = vpop.f32.mrb[81].mxu1 }
 0x3c9   : > { %v4250_v29 = vadd.f32 %v4244_v14, %v2056_v31  ;;  %v2952_v34 = vpop.f32.mrb[82].mxu1 }
 0x3ca   : > { %2187 = vmax.xlane.f32.xlu1 %v4247_v28  ;;  %v2059_v33 = vpop.f32.mrb[83].mxu1  ;;  %v4255_v16 = vadd.f32 %v2952_v34, %v4244_v14 }
 0x3cb   : > { %2183 = vmax.xlane.f32.xlu0 %v4250_v29  ;;  %v4258_v35 = vadd.f32 %v4244_v14, %v2059_v33 }
 0x3ce   : > { %2189 = vmax.xlane.f32.xlu1 %v4255_v16 }
 0x3cf   : > { %2185 = vmax.xlane.f32.xlu0 %v4258_v35 }
 0x3d7   : > { %v2955_v30 = vpop.f32.mrb[84].mxu1 }
 0x3d8   : > { %v4263_v17 = vadd.f32 %v2955_v30, %v4244_v14  ;;  %v2072_v36 = vpop.f32.mrb[85].mxu1 }
 0x3d9   : > { %v2956_v39 = vpop.f32.mrb[86].mxu1  ;;  %v4270_v37 = vadd.f32 %v4244_v14, %v2072_v36 }
 0x3da   : > { %v4266_v40 = vadd.f32 %v2956_v39, %v4244_v14  ;;  %v2075_v32 = vpop.f32.mrb[87].mxu1  ;;  %2195 = vmax.xlane.f32.xlu0 %v4263_v17 }
 0x3db   : > { %v4274_v38 = vadd.f32 %v4244_v14, %v2075_v32 }
 0x3dc   : > { %2197 = vmax.xlane.f32.xlu1 %v4266_v40 }
 0x3de   : > { %2191 = vmax.xlane.f32.xlu0 %v4270_v37 }
 0x3e0   : > { %2193 = vmax.xlane.f32.xlu1 %v4274_v38 }
 0x3e7   : > { %v2959_v18 = vpop.f32.mrb[88].mxu1 }
 0x3e8   : > { %v4279_v41 = vadd.f32 %v2959_v18, %v4244_v14  ;;  %v2088_v42 = vpop.f32.mrb[89].mxu1 }
 0x3e9   : > { %v2960_v19 = vpop.f32.mrb[90].mxu1  ;;  %v4286_v45 = vadd.f32 %v4244_v14, %v2088_v42 }
 0x3ea   : > { %v4282_v43 = vadd.f32 %v2960_v19, %v4244_v14  ;;  %v2091_v44 = vpop.f32.mrb[91].mxu1  ;;  %2203 = vmax.xlane.f32.xlu0 %v4279_v41 }
 0x3eb   : > { %v4290_v46 = vadd.f32 %v4244_v14, %v2091_v44 }
 0x3ec   : > { %2205 = vmax.xlane.f32.xlu1 %v4282_v43 }
 0x3ee   : > { %2199 = vmax.xlane.f32.xlu0 %v4286_v45 }
 0x3f0   : > { %2201 = vmax.xlane.f32.xlu1 %v4290_v46 }
 0x3f7   : > { %v2963_v47 = vpop.f32.mrb[92].mxu1 }
 0x3f8   : > { %v4295_v48 = vadd.f32 %v2963_v47, %v4244_v14  ;;  %v2104_v49 = vpop.f32.mrb[93].mxu1 }
 0x3f9   : > { %v2964_v50 = vpop.f32.mrb[94].mxu1  ;;  %v4302_v52 = vadd.f32 %v4244_v14, %v2104_v49 }
 0x3fa   : > { %v4298_v20 = vadd.f32 %v2964_v50, %v4244_v14  ;;  %v2107_v51 = vpop.f32.mrb[95].mxu1  ;;  %2211 = vmax.xlane.f32.xlu0 %v4295_v48 }
 0x3fb   : > { %v4306_v21 = vadd.f32 %v4244_v14, %v2107_v51 }
 0x3fc   : > { %2213 = vmax.xlane.f32.xlu1 %v4298_v20 }
 0x3fe   : > { %2207 = vmax.xlane.f32.xlu0 %v4302_v52 }
 0x400   : > { %2209 = vmax.xlane.f32.xlu1 %v4306_v21 }
 0x407   : > { %v2967_v53 = vpop.f32.mrb[96].mxu1 }
 0x408   : > { %v4311_v54 = vadd.f32 %v2967_v53, %v4244_v14  ;;  %v2120_v55 = vpop.f32.mrb[97].mxu1 }
 0x409   : > { %v2968_v56 = vpop.f32.mrb[98].mxu1  ;;  %v4318_v58 = vadd.f32 %v4244_v14, %v2120_v55 }
 0x40a   : > { %v4314_v22 = vadd.f32 %v2968_v56, %v4244_v14  ;;  %v2123_v57 = vpop.f32.mrb[99].mxu1  ;;  %2219 = vmax.xlane.f32.xlu0 %v4311_v54 }
 0x40b   : > { %v4322_v23 = vadd.f32 %v4244_v14, %v2123_v57 }
 0x40c   : > { %2221 = vmax.xlane.f32.xlu1 %v4314_v22 }
 0x40e   : > { %2215 = vmax.xlane.f32.xlu0 %v4318_v58 }
 0x410   : > { %2217 = vmax.xlane.f32.xlu1 %v4322_v23 }
 0x417   : > { %v2971_v59 = vpop.f32.mrb[100].mxu1 }
 0x418   : > { %v4327_v60 = vadd.f32 %v2971_v59, %v4244_v14  ;;  %v2136_v61 = vpop.f32.mrb[101].mxu1 }
 0x419   : > { %v2972_v62 = vpop.f32.mrb[102].mxu1  ;;  %v4334_v1 = vadd.f32 %v4244_v14, %v2136_v61 }
 0x41a   : > { %v4330_v63 = vadd.f32 %v2972_v62, %v4244_v14  ;;  %v2139_v0 = vpop.f32.mrb[103].mxu1  ;;  %2227 = vmax.xlane.f32.xlu0 %v4327_v60 }
 0x41b   : > { %v4338_v2 = vadd.f32 %v4244_v14, %v2139_v0 }
 0x41c   : > { %2229 = vmax.xlane.f32.xlu1 %v4330_v63 }
 0x41e   : > { %2223 = vmax.xlane.f32.xlu0 %v4334_v1 }
 0x420   : > { %2225 = vmax.xlane.f32.xlu1 %v4338_v2 }
 0x427   : > { %v2975_v24 = vpop.f32.mrb[104].mxu1 }
 0x428   : > { %v4343_v3 = vadd.f32 %v2975_v24, %v4244_v14  ;;  %v2152_v4 = vpop.f32.mrb[105].mxu1 }
 0x429   : > { %v2976_v25 = vpop.f32.mrb[106].mxu1  ;;  %v4350_v7 = vadd.f32 %v4244_v14, %v2152_v4 }
 0x42a   : > { %v4346_v5 = vadd.f32 %v2976_v25, %v4244_v14  ;;  %v2155_v6 = vpop.f32.mrb[107].mxu1  ;;  %2235 = vmax.xlane.f32.xlu0 %v4343_v3 }
 0x42b   : > { %v4354_v8 = vadd.f32 %v4244_v14, %v2155_v6 }
 0x42c   : > { %2237 = vmax.xlane.f32.xlu1 %v4346_v5 }
 0x42e   : > { %2231 = vmax.xlane.f32.xlu0 %v4350_v7 }
 0x430   : > { %2233 = vmax.xlane.f32.xlu1 %v4354_v8 }
 0x437   : > { %v2979_v9 = vpop.f32.mrb[108].mxu1 }
 0x438   : > { %v2168_v26 = vpop.f32.mrb[109].mxu1  ;;  %v4366_v13 = vadd.f32 %v2979_v9, %v4244_v14 }
 0x439   : > { %v4359_v10 = vadd.f32 %v4244_v14, %v2168_v26  ;;  %v2980_v11 = vpop.f32.mrb[110].mxu1 }
 0x43a   : > { %v2171_v27 = vpop.f32.mrb[111].mxu1  ;;  %v4370_v15 = vadd.f32 %v2980_v11, %v4244_v14 }
 0x43b   : > { %v4362_v12 = vadd.f32 %v4244_v14, %v2171_v27  ;;  %2239 = vmax.xlane.f32.xlu0 %v4359_v10 }
 0x43d   : > { %2241 = vmax.xlane.f32.xlu1 %v4362_v12 }
 0x43f   : > { %2243 = vmax.xlane.f32.xlu0 %v4366_v13 }
 0x441   : > { %2245 = vmax.xlane.f32.xlu1 %v4370_v15 }
 0x457   : > { %v2188_v31 = vpop.xlane.xlu1 %2187 }
 0x458   : > { %v2249_v34 = vsub.f32 %v4247_v28, %v2188_v31  ;;  %v2184_v33 = vpop.xlane.xlu0 %2183 }
 0x459   : > { %v2247_v30 = vsub.f32 %v4250_v29, %v2184_v33 }
 0x45a   : > { %v2283_v36 = vmul.f32 1.442695, %v2249_v34 }
 0x45b   : > { %v2279_v39 = vmul.f32 1.442695, %v2247_v30  ;;  %v2190_v32 = vpop.xlane.xlu1 %2189 }
 0x45c   : > { %3442 = vpow2.f32 %v2283_v36  ;;  %v2250_v18 = vsub.f32 %v4255_v16, %v2190_v32  ;;  %v2186_v42 = vpop.xlane.xlu0 %2185 }
 0x45d   : > { %v2248_v14 = vsub.f32 %v4258_v35, %v2186_v42  ;;  %3444 = vpow2.f32 %v2279_v39 }
 0x45e   : > { %v2285_v19 = vmul.f32 1.442695, %v2250_v18 }
 0x45f   : > { %v2281_v44 = vmul.f32 1.442695, %v2248_v14 }
 0x460   : > { %3446 = vpow2.f32 %v2285_v19 }
 0x461   : > { %3448 = vpow2.f32 %v2281_v44 }
 0x466   : > { %v4378_v47 = vpop.eup %3442 }
 0x467   : > { %2347 = vadd.xlane.f32.xlu0 %v4378_v47  ;;  %v2196_v28 = vpop.xlane.xlu0 %2195  ;;  %v4382_v49 = vpop.eup %3444 }
 0x468   : > { %v2253_v29 = vsub.f32 %v4263_v17, %v2196_v28 }
 0x469   : > { %v2198_v50 = vpop.xlane.xlu1 %2197 }
 0x46a   : > { %v4384_v51 = vpop.eup %3446  ;;  %v2291_v16 = vmul.f32 1.442695, %v2253_v29  ;;  %v2254_v35 = vsub.f32 %v4266_v40, %v2198_v50 }
 0x46b   : > { %2349 = vadd.xlane.f32.xlu1 %v4384_v51  ;;  %2343 = vadd.xlane.f32.xlu0 %v4382_v49  ;;  %v2192_v53 = vpop.xlane.xlu0 %2191  ;;  %v4390_v59 = vpop.eup %3448 }
 0x46c   : > { %3450 = vpow2.f32 %v2291_v16  ;;  %v2293_v55 = vmul.f32 1.442695, %v2254_v35  ;;  %v2251_v56 = vsub.f32 %v4270_v37, %v2192_v53 }
 0x46d   : > { %v2194_v57 = vpop.xlane.xlu1 %2193 }
 0x46e   : > { %3452 = vpow2.f32 %v2293_v55  ;;  %v2287_v17 = vmul.f32 1.442695, %v2251_v56  ;;  %v2252_v61 = vsub.f32 %v4274_v38, %v2194_v57 }
 0x46f   : > { %2345 = vadd.xlane.f32.xlu1 %v4390_v59 }
 0x470   : > { %3454 = vpow2.f32 %v2287_v17  ;;  %v2289_v40 = vmul.f32 1.442695, %v2252_v61 }
 0x472   : > { %3456 = vpow2.f32 %v2289_v40 }
 0x476   : > { %v4394_v62 = vpop.eup %3450 }
 0x477   : > { %2355 = vadd.xlane.f32.xlu0 %v4394_v62  ;;  %v2204_v0 = vpop.xlane.xlu0 %2203 }
 0x478   : > { %v4397_v24 = vpop.eup %3452  ;;  %v2257_v37 = vsub.f32 %v4279_v41, %v2204_v0 }
 0x479   : > { %v2206_v4 = vpop.xlane.xlu1 %2205  ;;  %2357 = vadd.xlane.f32.xlu1 %v4397_v24 }
 0x47a   : > { %v4401_v25 = vpop.eup %3454  ;;  %v2299_v38 = vmul.f32 1.442695, %v2257_v37  ;;  %v2258_v6 = vsub.f32 %v4282_v43, %v2206_v4 }
 0x47b   : > { %2351 = vadd.xlane.f32.xlu0 %v4401_v25  ;;  %v2200_v9 = vpop.xlane.xlu0 %2199 }
 0x47c   : > { %v4405_v26 = vpop.eup %3456  ;;  %3458 = vpow2.f32 %v2299_v38  ;;  %v2301_v11 = vmul.f32 1.442695, %v2258_v6  ;;  %v2255_v27 = vsub.f32 %v4286_v45, %v2200_v9 }
 0x47d   : > { %v2202_v31 = vpop.xlane.xlu1 %2201  ;;  %2353 = vadd.xlane.f32.xlu1 %v4405_v26 }
 0x47e   : > { %3460 = vpow2.f32 %v2301_v11  ;;  %v2295_v41 = vmul.f32 1.442695, %v2255_v27  ;;  %v2256_v34 = vsub.f32 %v4290_v46, %v2202_v31 }
 0x480   : > { %3462 = vpow2.f32 %v2295_v41  ;;  %v2297_v33 = vmul.f32 1.442695, %v2256_v34 }
 0x482   : > { %3464 = vpow2.f32 %v2297_v33 }
 0x486   : > { %v4410_v43 = vpop.eup %3458 }
 0x487   : > { %2363 = vadd.xlane.f32.xlu0 %v4410_v43  ;;  %v2212_v30 = vpop.xlane.xlu0 %2211 }
 0x488   : > { %v4413_v36 = vpop.eup %3460  ;;  %v2261_v39 = vsub.f32 %v4295_v48, %v2212_v30 }
 0x489   : > { %v2214_v45 = vpop.xlane.xlu1 %2213  ;;  %2365 = vadd.xlane.f32.xlu1 %v4413_v36 }
 0x48a   : > { %v4417_v32 = vpop.eup %3462  ;;  %v2307_v18 = vmul.f32 1.442695, %v2261_v39  ;;  %v2262_v46 = vsub.f32 %v4298_v20, %v2214_v45 }
 0x48b   : > { %2359 = vadd.xlane.f32.xlu0 %v4417_v32  ;;  %v2208_v42 = vpop.xlane.xlu0 %2207 }
 0x48c   : > { %v4421_v14 = vpop.eup %3464  ;;  %3466 = vpow2.f32 %v2307_v18  ;;  %v2309_v19 = vmul.f32 1.442695, %v2262_v46  ;;  %v2259_v44 = vsub.f32 %v4302_v52, %v2208_v42 }
 0x48d   : > { %v2210_v28 = vpop.xlane.xlu1 %2209  ;;  %2361 = vadd.xlane.f32.xlu1 %v4421_v14 }
 0x48e   : > { %3468 = vpow2.f32 %v2309_v19  ;;  %v2303_v48 = vmul.f32 1.442695, %v2259_v44  ;;  %v2260_v29 = vsub.f32 %v4306_v21, %v2210_v28 }
 0x490   : > { %3470 = vpow2.f32 %v2303_v48  ;;  %v2305_v50 = vmul.f32 1.442695, %v2260_v29 }
 0x492   : > { %3472 = vpow2.f32 %v2305_v50 }
 0x496   : > { %v4426_v20 = vpop.eup %3466 }
 0x497   : > { %2371 = vadd.xlane.f32.xlu0 %v4426_v20  ;;  %v2220_v16 = vpop.xlane.xlu0 %2219 }
 0x498   : > { %v4429_v35 = vpop.eup %3468  ;;  %v2265_v53 = vsub.f32 %v4311_v54, %v2220_v16 }
 0x499   : > { %v2222_v52 = vpop.xlane.xlu1 %2221  ;;  %2373 = vadd.xlane.f32.xlu1 %v4429_v35 }
 0x49a   : > { %v4433_v55 = vpop.eup %3470  ;;  %v2315_v56 = vmul.f32 1.442695, %v2265_v53  ;;  %v2266_v21 = vsub.f32 %v4314_v22, %v2222_v52 }
 0x49b   : > { %2367 = vadd.xlane.f32.xlu0 %v4433_v55  ;;  %v2216_v57 = vpop.xlane.xlu0 %2215 }
 0x49c   : > { %v4437_v17 = vpop.eup %3472  ;;  %3474 = vpow2.f32 %v2315_v56  ;;  %v2317_v61 = vmul.f32 1.442695, %v2266_v21  ;;  %v2263_v40 = vsub.f32 %v4318_v58, %v2216_v57 }
 0x49d   : > { %v2218_v0 = vpop.xlane.xlu1 %2217  ;;  %2369 = vadd.xlane.f32.xlu1 %v4437_v17 }
 0x49e   : > { %3476 = vpow2.f32 %v2317_v61  ;;  %v2311_v54 = vmul.f32 1.442695, %v2263_v40  ;;  %v2264_v37 = vsub.f32 %v4322_v23, %v2218_v0 }
 0x4a0   : > { %3478 = vpow2.f32 %v2311_v54  ;;  %v2313_v4 = vmul.f32 1.442695, %v2264_v37 }
 0x4a2   : > { %3480 = vpow2.f32 %v2313_v4 }
 0x4a6   : > { %v4442_v22 = vpop.eup %3474 }
 0x4a7   : > { %2379 = vadd.xlane.f32.xlu0 %v4442_v22  ;;  %v2228_v38 = vpop.xlane.xlu0 %2227 }
 0x4a8   : > { %v4445_v6 = vpop.eup %3476  ;;  %v2269_v9 = vsub.f32 %v4327_v60, %v2228_v38 }
 0x4a9   : > { %v2230_v58 = vpop.xlane.xlu1 %2229  ;;  %2381 = vadd.xlane.f32.xlu1 %v4445_v6 }
 0x4aa   : > { %v4449_v11 = vpop.eup %3478  ;;  %v2323_v27 = vmul.f32 1.442695, %v2269_v9  ;;  %v2270_v23 = vsub.f32 %v4330_v63, %v2230_v58 }
 0x4ab   : > { %2375 = vadd.xlane.f32.xlu0 %v4449_v11  ;;  %v2224_v31 = vpop.xlane.xlu0 %2223 }
 0x4ac   : > { %v4453_v41 = vpop.eup %3480  ;;  %3482 = vpow2.f32 %v2323_v27  ;;  %v2325_v34 = vmul.f32 1.442695, %v2270_v23  ;;  %v2267_v33 = vsub.f32 %v4334_v1, %v2224_v31 }
 0x4ad   : > { %v2226_v30 = vpop.xlane.xlu1 %2225  ;;  %2377 = vadd.xlane.f32.xlu1 %v4453_v41 }
 0x4ae   : > { %3484 = vpow2.f32 %v2325_v34  ;;  %v2319_v60 = vmul.f32 1.442695, %v2267_v33  ;;  %v2268_v39 = vsub.f32 %v4338_v2, %v2226_v30 }
 0x4b0   : > { %3486 = vpow2.f32 %v2319_v60  ;;  %v2321_v45 = vmul.f32 1.442695, %v2268_v39 }
 0x4b2   : > { %3488 = vpow2.f32 %v2321_v45 }
 0x4b6   : > { %v4458_v63 = vpop.eup %3482 }
 0x4b7   : > { %2387 = vadd.xlane.f32.xlu0 %v4458_v63  ;;  %v2236_v18 = vpop.xlane.xlu0 %2235 }
 0x4b8   : > { %v4461_v46 = vpop.eup %3484  ;;  %v2273_v42 = vsub.f32 %v4343_v3, %v2236_v18 }
 0x4b9   : > { %v2238_v1 = vpop.xlane.xlu1 %2237  ;;  %2389 = vadd.xlane.f32.xlu1 %v4461_v46 }
 0x4ba   : > { %v4465_v19 = vpop.eup %3486  ;;  %v2331_v44 = vmul.f32 1.442695, %v2273_v42  ;;  %v2274_v2 = vsub.f32 %v4346_v5, %v2238_v1 }
 0x4bb   : > { %2383 = vadd.xlane.f32.xlu0 %v4465_v19  ;;  %v2232_v28 = vpop.xlane.xlu0 %2231 }
 0x4bc   : > { %v4469_v48 = vpop.eup %3488  ;;  %3490 = vpow2.f32 %v2331_v44  ;;  %v2333_v29 = vmul.f32 1.442695, %v2274_v2  ;;  %v2271_v50 = vsub.f32 %v4350_v7, %v2232_v28 }
 0x4bd   : > { %v2234_v16 = vpop.xlane.xlu1 %2233  ;;  %2385 = vadd.xlane.f32.xlu1 %v4469_v48 }
 0x4be   : > { %3492 = vpow2.f32 %v2333_v29  ;;  %v2327_v3 = vmul.f32 1.442695, %v2271_v50  ;;  %v2272_v53 = vsub.f32 %v4354_v8, %v2234_v16 }
 0x4c0   : > { %3494 = vpow2.f32 %v2327_v3  ;;  %v2329_v52 = vmul.f32 1.442695, %v2272_v53 }
 0x4c2   : > { %3496 = vpow2.f32 %v2329_v52 }
 0x4c6   : > { %v4474_v5 = vpop.eup %3490 }
 0x4c7   : > { %2395 = vadd.xlane.f32.xlu0 %v4474_v5 }
 0x4c8   : > { %v4477_v56 = vpop.eup %3492  ;;  %v2240_v21 = vpop.xlane.xlu0 %2239 }
 0x4c9   : > { %v2275_v57 = vsub.f32 %v4359_v10, %v2240_v21  ;;  %2397 = vadd.xlane.f32.xlu1 %v4477_v56 }
 0x4ca   : > { %v4481_v7 = vpop.eup %3494  ;;  %v2242_v61 = vpop.xlane.xlu1 %2241 }
 0x4cb   : > { %v2335_v40 = vmul.f32 1.442695, %v2275_v57  ;;  %v2276_v8 = vsub.f32 %v4362_v12, %v2242_v61  ;;  %2391 = vadd.xlane.f32.xlu0 %v4481_v7 }
 0x4cc   : > { %v4485_v0 = vpop.eup %3496  ;;  %v2244_v54 = vpop.xlane.xlu0 %2243 }
 0x4cd   : > { %3498 = vpow2.f32 %v2335_v40  ;;  %v2337_v37 = vmul.f32 1.442695, %v2276_v8  ;;  %v2277_v4 = vsub.f32 %v4366_v13, %v2244_v54  ;;  %2393 = vadd.xlane.f32.xlu1 %v4485_v0 }
 0x4ce   : > { %v2246_v10 = vpop.xlane.xlu1 %2245 }
 0x4cf   : > { %3500 = vpow2.f32 %v2337_v37  ;;  %v2339_v38 = vmul.f32 1.442695, %v2277_v4  ;;  %v2278_v9 = vsub.f32 %v4370_v15, %v2246_v10 }
 0x4d1   : > { %3502 = vpow2.f32 %v2339_v38  ;;  %v2341_v58 = vmul.f32 1.442695, %v2278_v9 }
 0x4d3   : > { %3504 = vpow2.f32 %v2341_v58 }
 0x4d7   : > { %v4490_v12 = vpop.eup %3498 }
 0x4d8   : > { %2399 = vadd.xlane.f32.xlu0 %v4490_v12 }
 0x4d9   : > { %v4493_v27 = vpop.eup %3500 }
 0x4da   : > { %2401 = vadd.xlane.f32.xlu1 %v4493_v27 }
 0x4db   : > { %v4496_v13 = vpop.eup %3502 }
 0x4dc   : > { %2403 = vadd.xlane.f32.xlu0 %v4496_v13 }
 0x4dd   : > { %v4499_v23 = vpop.eup %3504 }
 0x4de   : > { %2405 = vadd.xlane.f32.xlu1 %v4499_v23 }
 0x4f4   : > { %v2348_v15 = vpop.xlane.xlu0 %2347 }
 0x4f5   : > { %3506 = vrcp.f32 %v2348_v15 }
 0x4f8   : > { %v2350_v31 = vpop.xlane.xlu1 %2349  ;;  %v2344_v34 = vpop.xlane.xlu0 %2343 }
 0x4f9   : > { %3508 = vrcp.f32 %v2350_v31 }
 0x4fa   : > { %3510 = vrcp.f32 %v2344_v34 }
 0x4fc   : > { %v2346_v33 = vpop.xlane.xlu1 %2345 }
 0x4fd   : > { %3512 = vrcp.f32 %v2346_v33 }
 0x4ff   : > { %v3507_v30 = vpop.eup %3506 }
 0x500   : > { %v2441_v60 = vmul.f32 %v3507_v30, %v4378_v47 }
 0x502   : > { %2473 = vst [vmem:[%s4504_s22 + $0x10] sm:$0xff] %v2441_v60 }
 0x503   : > { %v3509_v39 = vpop.eup %3508 }
 0x504   : > { %v3511_v45 = vpop.eup %3510  ;;  %v2442_v18 = vmul.f32 %v3509_v39, %v4384_v51  ;;  %v2356_v42 = vpop.xlane.xlu0 %2355 }
 0x505   : > { %v2439_v1 = vmul.f32 %v3511_v45, %v4382_v49  ;;  %3514 = vrcp.f32 %v2356_v42 }
 0x506   : > { %2474 = vst [vmem:[%s4504_s22 + $0x18] sm:$0xff] %v2442_v18  ;;  %v2358_v44 = vpop.xlane.xlu1 %2357 }
 0x507   : > { %v3513_v47 = vpop.eup %3512  ;;  %2471 = vst [vmem:[%s4504_s22] sm:$0xff] %v2439_v1  ;;  %3516 = vrcp.f32 %v2358_v44 }
 0x508   : > { %v2440_v2 = vmul.f32 %v3513_v47, %v4390_v59  ;;  %v2352_v28 = vpop.xlane.xlu0 %2351 }
 0x509   : > { %3518 = vrcp.f32 %v2352_v28 }
 0x50a   : > { %2472 = vst [vmem:[%s4504_s22 + $0x8] sm:$0xff] %v2440_v2  ;;  %v2354_v29 = vpop.xlane.xlu1 %2353 }
 0x50b   : > { %3520 = vrcp.f32 %v2354_v29 }
 0x50f   : > { %v3515_v51 = vpop.eup %3514 }
 0x510   : > { %v2445_v49 = vmul.f32 %v3515_v51, %v4394_v62 }
 0x511   : > { %v3517_v50 = vpop.eup %3516 }
 0x512   : > { %2477 = vst [vmem:[%s4504_s22 + $0x30] sm:$0xff] %v2445_v49  ;;  %v2446_v16 = vmul.f32 %v3517_v50, %v4397_v24 }
 0x513   : > { %v3519_v3 = vpop.eup %3518 }
 0x514   : > { %2478 = vst [vmem:[%s4504_s22 + $0x38] sm:$0xff] %v2446_v16  ;;  %v2443_v53 = vmul.f32 %v3519_v3, %v4401_v25  ;;  %v2364_v59 = vpop.xlane.xlu0 %2363 }
 0x515   : > { %v3521_v52 = vpop.eup %3520  ;;  %3522 = vrcp.f32 %v2364_v59 }
 0x516   : > { %2475 = vst [vmem:[%s4504_s22 + $0x20] sm:$0xff] %v2443_v53  ;;  %v2444_v21 = vmul.f32 %v3521_v52, %v4405_v26  ;;  %v2366_v57 = vpop.xlane.xlu1 %2365 }
 0x517   : > { %3524 = vrcp.f32 %v2366_v57 }
 0x518   : > { %2476 = vst [vmem:[%s4504_s22 + $0x28] sm:$0xff] %v2444_v21  ;;  %v2360_v62 = vpop.xlane.xlu0 %2359 }
 0x519   : > { %3526 = vrcp.f32 %v2360_v62 }
 0x51a   : > { %v2362_v61 = vpop.xlane.xlu1 %2361 }
 0x51b   : > { %3528 = vrcp.f32 %v2362_v61 }
 0x51f   : > { %v3523_v24 = vpop.eup %3522 }
 0x520   : > { %v2449_v25 = vmul.f32 %v3523_v24, %v4410_v43 }
 0x521   : > { %v3525_v40 = vpop.eup %3524 }
 0x522   : > { %2481 = vst [vmem:[%s4504_s22 + $0x50] sm:$0xff] %v2449_v25  ;;  %v2450_v8 = vmul.f32 %v3525_v40, %v4413_v36 }
 0x523   : > { %v3527_v54 = vpop.eup %3526 }
 0x524   : > { %2482 = vst [vmem:[%s4504_s22 + $0x58] sm:$0xff] %v2450_v8  ;;  %v2447_v26 = vmul.f32 %v3527_v54, %v4417_v32  ;;  %v2372_v37 = vpop.xlane.xlu0 %2371 }
 0x525   : > { %v3529_v4 = vpop.eup %3528  ;;  %3530 = vrcp.f32 %v2372_v37 }
 0x526   : > { %2479 = vst [vmem:[%s4504_s22 + $0x40] sm:$0xff] %v2447_v26  ;;  %v2448_v10 = vmul.f32 %v3529_v4, %v4421_v14  ;;  %v2374_v38 = vpop.xlane.xlu1 %2373 }
 0x527   : > { %3532 = vrcp.f32 %v2374_v38 }
 0x528   : > { %2480 = vst [vmem:[%s4504_s22 + $0x48] sm:$0xff] %v2448_v10  ;;  %v2368_v43 = vpop.xlane.xlu0 %2367 }
 0x529   : > { %3534 = vrcp.f32 %v2368_v43 }
 0x52a   : > { %v2370_v9 = vpop.xlane.xlu1 %2369 }
 0x52b   : > { %3536 = vrcp.f32 %v2370_v9 }
 0x52f   : > { %v3531_v36 = vpop.eup %3530 }
 0x530   : > { %v2453_v32 = vmul.f32 %v3531_v36, %v4426_v20 }
 0x531   : > { %v3533_v58 = vpop.eup %3532 }
 0x532   : > { %2485 = vst [vmem:[%s4504_s22 + $0x70] sm:$0xff] %v2453_v32  ;;  %v2454_v15 = vmul.f32 %v3533_v58, %v4429_v35 }
 0x533   : > { %v3535_v31 = vpop.eup %3534 }
 0x534   : > { %2486 = vst [vmem:[%s4504_s22 + $0x78] sm:$0xff] %v2454_v15  ;;  %v2451_v14 = vmul.f32 %v3535_v31, %v4433_v55  ;;  %v2380_v34 = vpop.xlane.xlu0 %2379 }
 0x535   : > { %v3537_v33 = vpop.eup %3536  ;;  %3538 = vrcp.f32 %v2380_v34 }
 0x536   : > { %2483 = vst [vmem:[%s4504_s22 + $0x60] sm:$0xff] %v2451_v14  ;;  %v2452_v30 = vmul.f32 %v3537_v33, %v4437_v17  ;;  %v2382_v60 = vpop.xlane.xlu1 %2381 }
 0x537   : > { %3540 = vrcp.f32 %v2382_v60 }
 0x538   : > { %2484 = vst [vmem:[%s4504_s22 + $0x68] sm:$0xff] %v2452_v30  ;;  %v2376_v20 = vpop.xlane.xlu0 %2375 }
 0x539   : > { %3542 = vrcp.f32 %v2376_v20 }
 0x53a   : > { %v2378_v39 = vpop.xlane.xlu1 %2377 }
 0x53b   : > { %3544 = vrcp.f32 %v2378_v39 }
 0x53f   : > { %v3539_v35 = vpop.eup %3538 }
 0x540   : > { %v2457_v55 = vmul.f32 %v3539_v35, %v4442_v22 }
 0x541   : > { %v3541_v45 = vpop.eup %3540 }
 0x542   : > { %2489 = vst [vmem:[%s4504_s22 + $0x90] sm:$0xff] %v2457_v55  ;;  %v2458_v18 = vmul.f32 %v3541_v45, %v4445_v6 }
 0x543   : > { %v3543_v42 = vpop.eup %3542 }
 0x544   : > { %2490 = vst [vmem:[%s4504_s22 + $0x98] sm:$0xff] %v2458_v18  ;;  %v2455_v17 = vmul.f32 %v3543_v42, %v4449_v11  ;;  %v2388_v1 = vpop.xlane.xlu0 %2387 }
 0x545   : > { %v3545_v44 = vpop.eup %3544  ;;  %3546 = vrcp.f32 %v2388_v1 }
 0x546   : > { %2487 = vst [vmem:[%s4504_s22 + $0x80] sm:$0xff] %v2455_v17  ;;  %v2456_v47 = vmul.f32 %v3545_v44, %v4453_v41  ;;  %v2390_v2 = vpop.xlane.xlu1 %2389 }
 0x547   : > { %3548 = vrcp.f32 %v2390_v2 }
 0x548   : > { %2488 = vst [vmem:[%s4504_s22 + $0x88] sm:$0xff] %v2456_v47  ;;  %v2384_v22 = vpop.xlane.xlu0 %2383 }
 0x549   : > { %3550 = vrcp.f32 %v2384_v22 }
 0x54a   : > { %v2386_v28 = vpop.xlane.xlu1 %2385 }
 0x54b   : > { %3552 = vrcp.f32 %v2386_v28 }
 0x54f   : > { %v3547_v6 = vpop.eup %3546 }
 0x550   : > { %v2461_v11 = vmul.f32 %v3547_v6, %v4458_v63 }
 0x551   : > { %v3549_v29 = vpop.eup %3548 }
 0x552   : > { %2493 = vst [vmem:[%s4504_s22 + $0xb0] sm:$0xff] %v2461_v11  ;;  %v2462_v51 = vmul.f32 %v3549_v29, %v4461_v46 }
 0x553   : > { %v3551_v49 = vpop.eup %3550 }
 0x554   : > { %2494 = vst [vmem:[%s4504_s22 + $0xb8] sm:$0xff] %v2462_v51  ;;  %v2459_v41 = vmul.f32 %v3551_v49, %v4465_v19  ;;  %v2396_v50 = vpop.xlane.xlu0 %2395 }
 0x555   : > { %v3553_v16 = vpop.eup %3552  ;;  %3554 = vrcp.f32 %v2396_v50 }
 0x556   : > { %2491 = vst [vmem:[%s4504_s22 + $0xa0] sm:$0xff] %v2459_v41  ;;  %v2460_v3 = vmul.f32 %v3553_v16, %v4469_v48  ;;  %v2398_v53 = vpop.xlane.xlu1 %2397 }
 0x557   : > { %3556 = vrcp.f32 %v2398_v53 }
 0x558   : > { %2492 = vst [vmem:[%s4504_s22 + $0xa8] sm:$0xff] %v2460_v3  ;;  %v2392_v63 = vpop.xlane.xlu0 %2391 }
 0x559   : > { %3558 = vrcp.f32 %v2392_v63 }
 0x55a   : > { %v2394_v59 = vpop.xlane.xlu1 %2393 }
 0x55b   : > { %3560 = vrcp.f32 %v2394_v59 }
 0x55f   : > { %v3555_v46 = vpop.eup %3554 }
 0x560   : > { %v2465_v19 = vmul.f32 %v3555_v46, %v4474_v5 }
 0x561   : > { %v3557_v52 = vpop.eup %3556 }
 0x562   : > { %2497 = vst [vmem:[%s4504_s22 + $0xd0] sm:$0xff] %v2465_v19  ;;  %v2466_v21 = vmul.f32 %v3557_v52, %v4477_v56 }
 0x563   : > { %v3559_v57 = vpop.eup %3558 }
 0x564   : > { %2498 = vst [vmem:[%s4504_s22 + $0xd8] sm:$0xff] %v2466_v21  ;;  %v2463_v48 = vmul.f32 %v3559_v57, %v4481_v7 }
 0x565   : > { %v3561_v62 = vpop.eup %3560  ;;  %v2400_v61 = vpop.xlane.xlu0 %2399 }
 0x566   : > { %2495 = vst [vmem:[%s4504_s22 + $0xc0] sm:$0xff] %v2463_v48  ;;  %v2464_v24 = vmul.f32 %v3561_v62, %v4485_v0  ;;  %3562 = vrcp.f32 %v2400_v61 }
 0x567   : > { %v2402_v25 = vpop.xlane.xlu1 %2401 }
 0x568   : > { %2496 = vst [vmem:[%s4504_s22 + $0xc8] sm:$0xff] %v2464_v24  ;;  %3564 = vrcp.f32 %v2402_v25 }
 0x569   : > { %v2404_v5 = vpop.xlane.xlu0 %2403 }
 0x56a   : > { %3566 = vrcp.f32 %v2404_v5 }
 0x56b   : > { %v2406_v56 = vpop.xlane.xlu1 %2405 }
 0x56c   : > { %3568 = vrcp.f32 %v2406_v56 }
 0x570   : > { %v3563_v7 = vpop.eup %3562 }
 0x571   : > { %v2467_v40 = vmul.f32 %v3563_v7, %v4490_v12 }
 0x572   : > { %v3565_v8 = vpop.eup %3564 }
 0x573   : > { %2499 = vst [vmem:[%s4504_s22 + $0xe0] sm:$0xff] %v2467_v40  ;;  %v2468_v0 = vmul.f32 %v3565_v8, %v4493_v27 }
 0x574   : > { %v3567_v54 = vpop.eup %3566 }
 0x575   : > { %2500 = vst [vmem:[%s4504_s22 + $0xe8] sm:$0xff] %v2468_v0  ;;  %v2469_v26 = vmul.f32 %v3567_v54, %v4496_v13 }
 0x576   : > { %v3569_v37 = vpop.eup %3568 }
 0x577   : > { %2501 = vst [vmem:[%s4504_s22 + $0xf0] sm:$0xff] %v2469_v26  ;;  %v2470_v12 = vmul.f32 %v3569_v37, %v4499_v23 }
 0x579   : > { %2502 = vst [vmem:[%s4504_s22 + $0xf8] sm:$0xff] %v2470_v12 }
 0x57a   : > { %3697 = shalt.err (!%p3694_p4)
}
 0x57b   : > { %s3698_s29 = scalar_lea.hbm %s4571_s8, 4096  ;;  %s3702_s14 = scalar_lea.hbm %s4627_s7, 8192 }
 0x57c   : > { %p3699_p9 = scmp.ne.s32.totalorder %s4571_s8, %s3698_s29  ;;  %p3703_p8 = scmp.lt.u32.totalorder %s4571_s8, %s4627_s7 }
 0x57d   : > { %p3704_p13 = scmp.lt.u32.totalorder %s3702_s14, %s3698_s29  ;;  %p3706_p10 = scmp.lt.u32.totalorder %s3698_s29, %s4571_s8 }
 0x57e   : > { %p3700_p0 = pnand %p3699_p9, %p3955_p5 }
 0x57f   : > { %p3705_p6 = por %p3704_p13, %p3703_p8 }
 0x580   : > { %p3701_p11 = pneg %p3700_p0 }
 0x581   : > { %p3707_p3 = por %p3706_p10, %p3705_p6 }
 0x583   : > { %p3708_p7 = pnand %p3707_p3, %p3701_p11 }
 0x585   : > { %3711 = shalt.err (!%p3708_p7)
}
 0x586   : > { %s3771_s23 = smov 128   ;;  %s3772_s13 = smov 8  }
 0x587   : > { %3155 = dma.vmem_to_hbm [thread:$0]  (%p3955_p5), %s4573_s10, 4096, %s4571_s8, %s2504_s28, %s3771_s23, %s3771_s23, %s3772_s13  }
 0x588 PF: > { %s4649_s15 = sld [smem:[#allocation15_spill]]  ;;  %s2532_s19 = sand.u32 1, %s3746_s24  }
 0x589   : > { %p4651_p2 = scmp.ge.s32.totalorder %s3758_s27, 2  ;;  %s2533_s21 = scalar_lea.sflag [#allocation4], %s2532_s19 }
 0x58e   : > { %p4650_p12 = scmp.ne.s32.totalorder %s4649_s15, 0 }
 0x590   : > { %p3172_p1 = pnand %p4651_p2, %p4650_p12 }
 0x592   : > { %3741 = dma.done.wait (!%p3172_p1), %s2533_s21, 4096  }
 0x593   : > { %3743 = vsyncadd (!%p3172_p1), %s2533_s21, 4294963200  ;;  %p22_p4 = scmp.ge.s32.totalorder %s3923_s18, 4   ;;  %s4652_s24 = smov %s3750_s25 }
 0x594   : > { %s4653_s25 = smov %s3754_s26  ;;  %s4654_s26 = smov %s3951_s12 }
 0x595   : > { %s4655_s27 = smov %s3923_s18  ;;  %24 = sbr.rel (!%p22_p4) target bundleno = 9 (0x9), region = 105 }
 0x59c   :  { %2538 = vsyncpa [#allocation3], 1 }
 0x59d   :  { %2540 = vsyncpa [#allocation3 + $0x1], 1 }
 0x59e   :  { %2541 = vsyncpa [#allocation6], 1 }
 0x59f   :  { %2542 = vsyncpa [#allocation9], 1 }
 0x5a0   :  { %2543 = vsyncpa [#allocation4], 1 }
 0x5a1   :  { %2545 = vsyncpa [#allocation4 + $0x1], 1 }

</bundles_post_ra>
